<compile_context>
chip_gen: v7x
topology: tpu7x:2x2x1
jax: 0.10.0
libtpu: 0.0.40
codegen_flags: <defaults>
</compile_context>

<pallas_src>
import functools

import jax
import jax.numpy as jnp
from jax.experimental import pallas as pl
from jax.experimental.pallas import tpu as pltpu

_LANE = 128     # lane width
_SUB = 16       # batch padding granule (bf16 sublane packing)
_NEG = -1e30    # "minus infinity" bias for padded vocab columns


def _round_up(n, m):
    return ((n + m - 1) // m) * m


# ---------------------------------------------------------------------------
# Kernel 1: bidirectional LSTM recurrence over one batch tile
# ---------------------------------------------------------------------------
def _bilstm_kernel(x_ref,       # (T, TB, Dp)   bf16  time-major input tile
                   wih_ref,     # (Dp, 8Hp)     bf16  [fwd gates | bwd gates]
                   b_ref,       # (1, 8Hp)      f32   combined biases
                   whhf_ref,    # (Hp, 4Hp)     bf16
                   whhb_ref,    # (Hp, 4Hp)     bf16
                   hf_ref,      # (T, TB, Hp)   bf16  out: forward hidden
                   hb_ref,      # (T, TB, Hp)   bf16  out: backward hidden
                   ginf_scr,    # (T, TB, 4Hp)  bf16  hoisted input-proj, fwd
                   ginb_scr):   # (T, TB, 4Hp)  bf16  hoisted input-proj, bwd
    T, TB, Dp = x_ref.shape
    Hp = whhf_ref.shape[0]
    G = 4 * Hp

    # ---- 1) fused, hoisted input projection (single wide MXU matmul for both
    #         directions), chunked over T so the f32 temporary stays bounded --
    ct = max(1, min(T, 512 // TB))          # <=512 projection rows live in f32
    nct = pl.cdiv(T, ct)
    bias = b_ref[...]
    wih = wih_ref[...]

    def proj_body(ci, carry):
        t0 = jnp.minimum(ci * ct, T - ct)   # clamp: last chunk may overlap
        xc = x_ref[pl.ds(t0, ct), :, :].reshape(ct * TB, Dp)
        g = jnp.dot(xc, wih, preferred_element_type=jnp.float32) + bias
        ginf_scr[pl.ds(t0, ct), :, :] = (
            g[:, :G].reshape(ct, TB, G).astype(ginf_scr.dtype))
        ginb_scr[pl.ds(t0, ct), :, :] = (
            g[:, G:].reshape(ct, TB, G).astype(ginb_scr.dtype))
        return carry

    jax.lax.fori_loop(0, nct, proj_body, 0)

    whh_f = whhf_ref[...]
    whh_b = whhb_ref[...]

    def sigmoid(z):            # tanh-form: one EUP op instead of exp + recip
        return 0.5 * (jnp.tanh(0.5 * z) + 1.0)

    def gates_to_hc(g, c):     # PyTorch gate order i, f, g, o; f32 math / cell
        i = sigmoid(g[:, 0 * Hp:1 * Hp])
        f = sigmoid(g[:, 1 * Hp:2 * Hp])
        gg = jnp.tanh(g[:, 2 * Hp:3 * Hp])
        o = sigmoid(g[:, 3 * Hp:4 * Hp])
        c_new = f * c + i * gg
        h_new = o * jnp.tanh(c_new)
        return h_new, c_new

    zeros = jnp.zeros((TB, Hp), jnp.float32)

    # ---- 2) fused forward/backward recurrence (independent chains interleaved
    #         so their serial latencies hide each other) ----------------------
    def body(s, carry):
        hf, cf, hb, cb = carry
        sb = T - 1 - s
        gf = ginf_scr[s].astype(jnp.float32) + jnp.dot(
            hf.astype(jnp.bfloat16), whh_f, preferred_element_type=jnp.float32)
        gb = ginb_scr[sb].astype(jnp.float32) + jnp.dot(
            hb.astype(jnp.bfloat16), whh_b, preferred_element_type=jnp.float32)
        hf, cf = gates_to_hc(gf, cf)
        hb, cb = gates_to_hc(gb, cb)
        hf_ref[s] = hf.astype(hf_ref.dtype)     # bf16 stores: half the vst traffic
        hb_ref[sb] = hb.astype(hb_ref.dtype)
        return (hf, cf, hb, cb)

    jax.lax.fori_loop(0, T, body, (zeros, zeros, zeros, zeros))


# ---------------------------------------------------------------------------
# Kernel 2: FC (split weights, no 2H concat) + lane-dense log_softmax
# ---------------------------------------------------------------------------
def _fc_logsoftmax_kernel(hf_ref,    # (TT, TB, Hp) bf16
                          hb_ref,    # (TT, TB, Hp) bf16
                          wfcf_ref,  # (Hp, Vp)     bf16
                          wfcb_ref,  # (Hp, Vp)     bf16
                          bfc_ref,   # (1, Vp)      f32  (padded cols = -1e30)
                          out_ref):  # (TT, TB, Vp)
    TT, TB, Hp = hf_ref.shape
    Vp = out_ref.shape[-1]
    hf2d = hf_ref[...].reshape(TT * TB, Hp)
    hb2d = hb_ref[...].reshape(TT * TB, Hp)
    logits = (jnp.dot(hf2d, wfcf_ref[...], preferred_element_type=jnp.float32)
              + jnp.dot(hb2d, wfcb_ref[...], preferred_element_type=jnp.float32)
              + bfc_ref[...])
    m = jnp.max(logits, axis=-1, keepdims=True)
    lse = m + jnp.log(jnp.sum(jnp.exp(logits - m), axis=-1, keepdims=True))
    out_ref[...] = (logits - lse).reshape(TT, TB, Vp).astype(out_ref.dtype)


# ---------------------------------------------------------------------------
# Host-side helpers
# ---------------------------------------------------------------------------
def _pad_gate_blocks(w, H, Hp):
    """(R, 4H) -> (R, 4Hp): zero-pad each of the i/f/g/o blocks to Hp lanes."""
    if Hp == H:
        return w
    blocks = [jnp.pad(w[:, k * H:(k + 1) * H], ((0, 0), (0, Hp - H)))
              for k in range(4)]
    return jnp.concatenate(blocks, axis=1)


@functools.lru_cache(maxsize=1)
def _vmem_capacity_bytes():
    try:
        cap = getattr(pltpu.get_tpu_info(), "vmem_capacity_bytes", None)
        if cap:
            return int(cap)
    except Exception:
        pass
    return 64 * 1024 * 1024      # conservative (v7x-sized) fallback


def _pick_batch_tile(B, tb_cap):
    """Pick a batch tile (multiple of 16, <= tb_cap) minimizing padding."""
    Bp0 = _round_up(B, _SUB)
    tb_cap = max(_SUB, (tb_cap // _SUB) * _SUB)
    best = None
    for tb in range(_SUB, min(tb_cap, Bp0) + 1, _SUB):
        padded = _round_up(Bp0, tb)
        key = (padded - Bp0, -tb)          # least padding, then biggest tile
        if best is None or key < best[0]:
            best = (key, tb, padded)
    _, tb, padded = best
    return tb, padded


@functools.partial(jax.jit, static_argnames=("out_dtype",))
def text_head_ctc(x, params, out_dtype=jnp.float32):
    """x: (B, T, D) float32, batch_first like the PyTorch module.

    Returns (T, B, V) log-probs (== PyTorch output after permute(1,0,2)).
    """
    B, T, D = x.shape
    H = params["whh_f"].shape[0]
    V = params["wfc"].shape[1]

    Dp = _round_up(D, _LANE)
    Hp = _round_up(H, _LANE)
    Vp = _round_up(V, _LANE)

    # ---- generation-aware VMEM budget and batch-tile selection --------------
    vmem_cap = _vmem_capacity_bytes()
    vmem_limit = max(int(vmem_cap * 7 // 8), 32 * 1024 * 1024)
    small_vmem = vmem_cap < 96 * 1024 * 1024       # v7x-class chip (64 MiB, 2 TC)
    tb_cap = 128 if small_vmem else 256            # 256-row tiles on 128-MiB chips

    # shrink the tile cap so kernel-1 blocks + scratch fit the budget
    w1_bytes = (Dp * 8 * Hp + 2 * Hp * 4 * Hp) * 2 + 8 * Hp * 4

    def _k1_tile_bytes(tb):
        xb = T * tb * Dp * 2               # bf16 input block
        hb = 2 * T * tb * Hp * 2           # two bf16 output blocks
        gin = 2 * T * tb * 4 * Hp * 2      # two bf16 gin scratches
        return 2 * (xb + hb) + gin         # blocks double-buffered

    budget = int(0.7 * vmem_limit) - w1_bytes
    tb_fit = _SUB
    for tb in range(_SUB, tb_cap + 1, _SUB):
        if _k1_tile_bytes(tb) <= budget:
            tb_fit = tb
    TB, Bp = _pick_batch_tile(B, min(tb_cap, tb_fit))
    # TODO(synk): for very long T the per-tile x/gin buffers should be streamed
    # in T-chunks (nested emit_pipeline) instead of living whole in VMEM.

    # on small-VMEM (2-TensorCore) chips, prefer >=2 batch tiles so the serial
    # recurrence is sharded across both cores
    if small_vmem and Bp // TB == 1 and Bp >= 2 * _SUB and (Bp // 2) % _SUB == 0:
        TB = Bp // 2

    bf16 = jnp.bfloat16

    # time-major, zero-padded, bf16 input
    x_tm = jnp.transpose(x, (1, 0, 2))                               # (T, B, D)
    x_p = jnp.pad(x_tm, ((0, 0), (0, Bp - B), (0, Dp - D))).astype(bf16)

    def prep_dir(wih, whh, b):
        wih_p = _pad_gate_blocks(jnp.pad(wih, ((0, Dp - D), (0, 0))), H, Hp)
        whh_p = _pad_gate_blocks(jnp.pad(whh, ((0, Hp - H), (0, 0))), H, Hp)
        b_p = _pad_gate_blocks(b, H, Hp)
        return wih_p, whh_p.astype(bf16), b_p.astype(jnp.float32)

    wihf, whhf, bf_ = prep_dir(params["wih_f"], params["whh_f"], params["b_f"])
    wihb, whhb, bb_ = prep_dir(params["wih_b"], params["whh_b"], params["b_b"])
    wih_cat = jnp.concatenate([wihf, wihb], axis=1).astype(bf16)     # (Dp, 8Hp)
    b_cat = jnp.concatenate([bf_, bb_], axis=1)                      # (1, 8Hp)

    wfc = params["wfc"]                                              # (2H, V)
    wfcf = jnp.pad(wfc[:H], ((0, Hp - H), (0, Vp - V))).astype(bf16)
    wfcb = jnp.pad(wfc[H:], ((0, Hp - H), (0, Vp - V))).astype(bf16)
    bfc = jnp.pad(params["bfc"], ((0, 0), (0, Vp - V)),
                  constant_values=_NEG).astype(jnp.float32)

    # constant weights: whole-array VMEM-resident (fetched once, not re-blocked)
    vmem_res = pl.BlockSpec(memory_space=pltpu.MemorySpace.VMEM)

    # ---- kernel 1: recurrence, grid over batch tiles -------------------------
    h_sds = jax.ShapeDtypeStruct((T, Bp, Hp), bf16)
    hf, hb = pl.pallas_call(
        _bilstm_kernel,
        out_shape=(h_sds, h_sds),
        grid_spec=pltpu.PrefetchScalarGridSpec(
            num_scalar_prefetch=0,
            grid=(Bp // TB,),
            in_specs=[
                pl.BlockSpec((T, TB, Dp), lambda b: (0, b, 0)),      # x tile
                vmem_res, vmem_res, vmem_res, vmem_res,              # weights
            ],
            out_specs=(pl.BlockSpec((T, TB, Hp), lambda b: (0, b, 0)),
                       pl.BlockSpec((T, TB, Hp), lambda b: (0, b, 0))),
            scratch_shapes=[pltpu.VMEM((T, TB, 4 * Hp), bf16),
                            pltpu.VMEM((T, TB, 4 * Hp), bf16)],
        ),
        compiler_params=pltpu.CompilerParams(
            dimension_semantics=("parallel",),
            vmem_limit_bytes=vmem_limit),
    )(x_p, wih_cat, b_cat, whhf, whhb)

    # ---- kernel 2: FC + log_softmax, grid over (batch tiles, time tiles) -----
    TT = max(1, min(T, (6 * 1024 * 1024) // (TB * Vp * 4)))   # ~6 MiB out block
    Tp = _round_up(T, TT)
    if Tp != T:
        pad_t = ((0, Tp - T), (0, 0), (0, 0))
        hf = jnp.pad(hf, pad_t)
        hb = jnp.pad(hb, pad_t)

    out_p = pl.pallas_call(
        _fc_logsoftmax_kernel,
        out_shape=jax.ShapeDtypeStruct((Tp, Bp, Vp), out_dtype),
        grid_spec=pltpu.PrefetchScalarGridSpec(
            num_scalar_prefetch=0,
            grid=(Bp // TB, Tp // TT),
            in_specs=[
                pl.BlockSpec((TT, TB, Hp), lambda b, t: (t, b, 0)),
                pl.BlockSpec((TT, TB, Hp), lambda b, t: (t, b, 0)),
                vmem_res, vmem_res, vmem_res,
            ],
            out_specs=pl.BlockSpec((TT, TB, Vp), lambda b, t: (t, b, 0)),
        ),
        compiler_params=pltpu.CompilerParams(
            dimension_semantics=("parallel", "parallel"),
            vmem_limit_bytes=vmem_limit),
    )(hf, hb, wfcf, wfcb, bfc)

    return out_p[:T, :B, :V]                  # strip time/batch/vocab padding


# ---------------------------------------------------------------------------
# Parameter init + pure-JAX reference (mirrors the kernel's bf16 precision)
# ---------------------------------------------------------------------------
def init_params(key, input_dim, hidden_dim, vocab_size):
    """Deterministic synthetic init mirroring the PyTorch parameter shapes."""
    H, D, V = hidden_dim, input_dim, vocab_size
    bound = 1.0 / jnp.sqrt(jnp.float32(H))
    keys = jax.random.split(key, 10)

    def u(k, shape):
        return jax.random.uniform(k, shape, jnp.float32, -bound, bound)

    w_ih_f, w_hh_f = u(keys[0], (4 * H, D)), u(keys[1], (4 * H, H))
    b_ih_f, b_hh_f = u(keys[2], (4 * H,)), u(keys[3], (4 * H,))
    w_ih_b, w_hh_b = u(keys[4], (4 * H, D)), u(keys[5], (4 * H, H))
    b_ih_b, b_hh_b = u(keys[6], (4 * H,)), u(keys[7], (4 * H,))
    w_fc = u(keys[8], (V, 2 * H))
    b_fc = u(keys[9], (V,))

    return {
        "wih_f": w_ih_f.T, "whh_f": w_hh_f.T,
        "b_f": (b_ih_f + b_hh_f).reshape(1, 4 * H),
        "wih_b": w_ih_b.T, "whh_b": w_hh_b.T,
        "b_b": (b_ih_b + b_hh_b).reshape(1, 4 * H),
        "wfc": w_fc.T, "bfc": b_fc.reshape(1, V),
    }


def text_head_ctc_reference(x, params):
    """Pure-JAX reference of the PyTorch forward pass, mirroring the kernel's
    bf16-operand / bf16-stored-intermediate / f32-accumulate precision."""
    B, T, D = x.shape
    H = params["whh_f"].shape[0]
    V = params["wfc"].shape[1]
    xb = jnp.transpose(x, (1, 0, 2)).astype(jnp.bfloat16)            # (T, B, D)

    def run_dir(wih, whh, b, reverse):
        gin = (jnp.dot(xb.reshape(T * B, D), wih.astype(jnp.bfloat16),
                       preferred_element_type=jnp.float32)
               .reshape(T, B, 4 * H) + b)
        gin = gin.astype(jnp.bfloat16)           # mirror bf16 gin scratch
        xs = gin[::-1] if reverse else gin
        whh16 = whh.astype(jnp.bfloat16)

        def step(carry, g_in):
            h, c = carry
            g = g_in.astype(jnp.float32) + jnp.dot(
                h.astype(jnp.bfloat16), whh16, preferred_element_type=jnp.float32)
            i = jax.nn.sigmoid(g[:, 0 * H:1 * H])
            f = jax.nn.sigmoid(g[:, 1 * H:2 * H])
            gg = jnp.tanh(g[:, 2 * H:3 * H])
            o = jax.nn.sigmoid(g[:, 3 * H:4 * H])
            c = f * c + i * gg
            h = o * jnp.tanh(c)
            return (h, c), h.astype(jnp.bfloat16)   # mirror bf16 hidden storage

        z = jnp.zeros((B, H), jnp.float32)
        (_, _), hs = jax.lax.scan(step, (z, z), xs)
        return hs[::-1] if reverse else hs                            # (T, B, H)

    hf = run_dir(params["wih_f"], params["whh_f"], params["b_f"], False)
    hb = run_dir(params["wih_b"], params["whh_b"], params["b_b"], True)
    wfc = params["wfc"].astype(jnp.bfloat16)                          # (2H, V)
    logits = (jnp.dot(hf.reshape(T * B, H), wfc[:H],
                      preferred_element_type=jnp.float32)
              + jnp.dot(hb.reshape(T * B, H), wfc[H:],
                        preferred_element_type=jnp.float32)
              + params["bfc"]).reshape(T, B, V)
    return jax.nn.log_softmax(logits, axis=-1)                        # (T, B, V)


if __name__ == "__main__":
    B, T, D, H, V = 2, 8, 32, 32, 16

    key = jax.random.PRNGKey(0)
    kx, kp = jax.random.split(key)
    x = jax.random.normal(kx, (B, T, D), dtype=jnp.float32)
    params = init_params(kp, D, H, V)

    out = jax.block_until_ready(text_head_ctc(x, params))
    assert out.shape == (T, B, V), out.shape
    assert bool(jnp.all(jnp.isfinite(out))), "non-finite output"

    ref = jax.block_until_ready(text_head_ctc_reference(x, params))
    err = float(jnp.max(jnp.abs(out - ref)))
    assert err < 3e-3, f"max abs err {err}"

    print("KERNEL_OK")
</pallas_src>

<mosaic_0001>
module attributes {stable_mosaic.version = 11 : i64} {
  func.func @_bilstm_kernel(%arg0: i32, %arg1: memref<8x16x128xbf16, #tpu.memory_space<vmem>>, %arg2: memref<128x1024xbf16, #tpu.memory_space<vmem>>, %arg3: memref<1x1024xf32, #tpu.memory_space<vmem>>, %arg4: memref<128x512xbf16, #tpu.memory_space<vmem>>, %arg5: memref<128x512xbf16, #tpu.memory_space<vmem>>, %arg6: memref<8x16x128xbf16, #tpu.memory_space<vmem>>, %arg7: memref<8x16x128xbf16, #tpu.memory_space<vmem>>, %arg8: memref<8x16x512xbf16, #tpu.memory_space<vmem>>, %arg9: memref<8x16x512xbf16, #tpu.memory_space<vmem>>) attributes {dimension_semantics = [#tpu.dimension_semantics<parallel>], iteration_bounds = array<i64: 1>, scalar_prefetch = 0 : i64, scratch_operands = 2 : i64, tpu.core_type = #tpu.core_type<tc>, window_params = [{transform_indices = @transform_0, window_bounds = array<i64: 8, 16, 128>}, {pipeline_mode = #tpu.pipeline_mode<synchronous>, transform_indices = @transform_1, window_bounds = array<i64: 128, 1024>}, {pipeline_mode = #tpu.pipeline_mode<synchronous>, transform_indices = @transform_2, window_bounds = array<i64: 1, 1024>}, {pipeline_mode = #tpu.pipeline_mode<synchronous>, transform_indices = @transform_3, window_bounds = array<i64: 128, 512>}, {pipeline_mode = #tpu.pipeline_mode<synchronous>, transform_indices = @transform_4, window_bounds = array<i64: 128, 512>}, {transform_indices = @transform_5, window_bounds = array<i64: 8, 16, 128>}, {transform_indices = @transform_6, window_bounds = array<i64: 8, 16, 128>}]} {
    %c0 = arith.constant 0 : index
    %c0_0 = arith.constant 0 : index
    %0 = vector.load %arg3[%c0, %c0_0] : memref<1x1024xf32, #tpu.memory_space<vmem>>, vector<1x1024xf32>
    %c0_1 = arith.constant 0 : index
    %c0_2 = arith.constant 0 : index
    %1 = vector.load %arg2[%c0_1, %c0_2] : memref<128x1024xbf16, #tpu.memory_space<vmem>>, vector<128x1024xbf16>
    %c0_i32 = arith.constant 0 : i32
    %c8_i32 = arith.constant 8 : i32
    %2 = arith.muli %c0_i32, %c8_i32 : i32
    %c0_i32_3 = arith.constant 0 : i32
    %3 = arith.minsi %2, %c0_i32_3 : i32
    %4 = arith.index_cast %3 : i32 to index
    %c0_4 = arith.constant 0 : index
    %c0_5 = arith.constant 0 : index
    %5 = vector.load %arg1[%4, %c0_4, %c0_5] : memref<8x16x128xbf16, #tpu.memory_space<vmem>>, vector<8x16x128xbf16>
    %6 = vector.shape_cast %5 : vector<8x16x128xbf16> to vector<128x128xbf16>
    %cst = arith.constant dense<0.000000e+00> : vector<128x1024xf32>
    %7 = tpu.matmul %6, %1, %cst {dimension_numbers = #tpu.dot_dimension_numbers<[1], [0], [0], [1], [0, 0, 1, 1], [], []>} : vector<128x128xbf16>, vector<128x1024xbf16>, vector<128x1024xf32> -> vector<128x1024xf32>
    %8 = vector.broadcast %0 : vector<1x1024xf32> to vector<128x1024xf32>
    %9 = arith.addf %7, %8 : vector<128x1024xf32>
    %10 = vector.extract_strided_slice %9 {offsets = [0, 0], sizes = [128, 512], strides = [1, 1]} : vector<128x1024xf32> to vector<128x512xf32>
    %11 = vector.shape_cast %10 : vector<128x512xf32> to vector<8x16x512xf32>
    %12 = arith.truncf %11 : vector<8x16x512xf32> to vector<8x16x512xbf16>
    %13 = arith.index_cast %3 : i32 to index
    %c0_6 = arith.constant 0 : index
    %c0_7 = arith.constant 0 : index
    %14 = vector.load %arg8[%13, %c0_6, %c0_7] : memref<8x16x512xbf16, #tpu.memory_space<vmem>>, vector<8x16x512xbf16>
    tpu.vector_store %arg8[%13, %c0_6, %c0_7], %12 {strides = array<i32>} : memref<8x16x512xbf16, #tpu.memory_space<vmem>>, vector<8x16x512xbf16>,
    %15 = vector.extract_strided_slice %9 {offsets = [0, 512], sizes = [128, 512], strides = [1, 1]} : vector<128x1024xf32> to vector<128x512xf32>
    %16 = vector.shape_cast %15 : vector<128x512xf32> to vector<8x16x512xf32>
    %17 = arith.truncf %16 : vector<8x16x512xf32> to vector<8x16x512xbf16>
    %18 = arith.index_cast %3 : i32 to index
    %c0_8 = arith.constant 0 : index
    %c0_9 = arith.constant 0 : index
    %19 = vector.load %arg9[%18, %c0_8, %c0_9] : memref<8x16x512xbf16, #tpu.memory_space<vmem>>, vector<8x16x512xbf16>
    tpu.vector_store %arg9[%18, %c0_8, %c0_9], %17 {strides = array<i32>} : memref<8x16x512xbf16, #tpu.memory_space<vmem>>, vector<8x16x512xbf16>,
    %c1_i32 = arith.constant 1 : i32
    %c0_10 = arith.constant 0 : index
    %c0_11 = arith.constant 0 : index
    %20 = vector.load %arg4[%c0_10, %c0_11] : memref<128x512xbf16, #tpu.memory_space<vmem>>, vector<128x512xbf16>
    %c0_12 = arith.constant 0 : index
    %c0_13 = arith.constant 0 : index
    %21 = vector.load %arg5[%c0_12, %c0_13] : memref<128x512xbf16, #tpu.memory_space<vmem>>, vector<128x512xbf16>
    %cst_14 = arith.constant 0.000000e+00 : f32
    %22 = vector.broadcast %cst_14 : f32 to vector<16x128xf32>
    %c0_i32_15 = arith.constant 0 : i32
    %c8_i32_16 = arith.constant 8 : i32
    %23 = arith.addi %c0_i32_15, %c8_i32_16 : i32
    %c1_i32_17 = arith.constant 1 : i32
    %24:4 = scf.for %arg10 = %c0_i32_15 to %23 step %c1_i32_17 iter_args(%arg11 = %22, %arg12 = %22, %arg13 = %22, %arg14 = %22) -> (vector<16x128xf32>, vector<16x128xf32>, vector<16x128xf32>, vector<16x128xf32>)  : i32 {
      %c7_i32 = arith.constant 7 : i32
      %25 = arith.subi %c7_i32, %arg10 : i32
      %26 = arith.index_cast %arg10 : i32 to index
      %c0_19 = arith.constant 0 : index
      %c0_20 = arith.constant 0 : index
      %27 = vector.load %arg8[%26, %c0_19, %c0_20] : memref<8x16x512xbf16, #tpu.memory_space<vmem>>, vector<1x16x512xbf16>
      %28 = vector.shape_cast %27 : vector<1x16x512xbf16> to vector<16x512xbf16>
      %29 = arith.extf %28 : vector<16x512xbf16> to vector<16x512xf32>
      %30 = arith.truncf %arg11 : vector<16x128xf32> to vector<16x128xbf16>
      %cst_21 = arith.constant dense<0.000000e+00> : vector<16x512xf32>
      %31 = tpu.matmul %30, %20, %cst_21 {dimension_numbers = #tpu.dot_dimension_numbers<[1], [0], [0], [1], [0, 0, 1, 1], [], []>} : vector<16x128xbf16>, vector<128x512xbf16>, vector<16x512xf32> -> vector<16x512xf32>
      %32 = arith.addf %29, %31 : vector<16x512xf32>
      %33 = arith.index_cast %25 : i32 to index
      %c0_22 = arith.constant 0 : index
      %c0_23 = arith.constant 0 : index
      %34 = vector.load %arg9[%33, %c0_22, %c0_23] : memref<8x16x512xbf16, #tpu.memory_space<vmem>>, vector<1x16x512xbf16>
      %35 = vector.shape_cast %34 : vector<1x16x512xbf16> to vector<16x512xbf16>
      %36 = arith.extf %35 : vector<16x512xbf16> to vector<16x512xf32>
      %37 = arith.truncf %arg13 : vector<16x128xf32> to vector<16x128xbf16>
      %cst_24 = arith.constant dense<0.000000e+00> : vector<16x512xf32>
      %38 = tpu.matmul %37, %21, %cst_24 {dimension_numbers = #tpu.dot_dimension_numbers<[1], [0], [0], [1], [0, 0, 1, 1], [], []>} : vector<16x128xbf16>, vector<128x512xbf16>, vector<16x512xf32> -> vector<16x512xf32>
      %39 = arith.addf %36, %38 : vector<16x512xf32>
      %40 = vector.extract_strided_slice %32 {offsets = [0, 0], sizes = [16, 128], strides = [1, 1]} : vector<16x512xf32> to vector<16x128xf32>
      %cst_25 = arith.constant 5.000000e-01 : f32
      %41 = vector.broadcast %cst_25 : f32 to vector<16x128xf32>
      %42 = arith.mulf %41, %40 : vector<16x128xf32>
      %43 = math.tanh %42 : vector<16x128xf32>
      %cst_26 = arith.constant 1.000000e+00 : f32
      %44 = vector.broadcast %cst_26 : f32 to vector<16x128xf32>
      %45 = arith.addf %43, %44 : vector<16x128xf32>
      %cst_27 = arith.constant 5.000000e-01 : f32
      %46 = vector.broadcast %cst_27 : f32 to vector<16x128xf32>
      %47 = arith.mulf %46, %45 : vector<16x128xf32>
      %48 = vector.extract_strided_slice %32 {offsets = [0, 128], sizes = [16, 128], strides = [1, 1]} : vector<16x512xf32> to vector<16x128xf32>
      %cst_28 = arith.constant 5.000000e-01 : f32
      %49 = vector.broadcast %cst_28 : f32 to vector<16x128xf32>
      %50 = arith.mulf %49, %48 : vector<16x128xf32>
      %51 = math.tanh %50 : vector<16x128xf32>
      %cst_29 = arith.constant 1.000000e+00 : f32
      %52 = vector.broadcast %cst_29 : f32 to vector<16x128xf32>
      %53 = arith.addf %51, %52 : vector<16x128xf32>
      %cst_30 = arith.constant 5.000000e-01 : f32
      %54 = vector.broadcast %cst_30 : f32 to vector<16x128xf32>
      %55 = arith.mulf %54, %53 : vector<16x128xf32>
      %56 = vector.extract_strided_slice %32 {offsets = [0, 256], sizes = [16, 128], strides = [1, 1]} : vector<16x512xf32> to vector<16x128xf32>
      %57 = math.tanh %56 : vector<16x128xf32>
      %58 = vector.extract_strided_slice %32 {offsets = [0, 384], sizes = [16, 128], strides = [1, 1]} : vector<16x512xf32> to vector<16x128xf32>
      %cst_31 = arith.constant 5.000000e-01 : f32
      %59 = vector.broadcast %cst_31 : f32 to vector<16x128xf32>
      %60 = arith.mulf %59, %58 : vector<16x128xf32>
      %61 = math.tanh %60 : vector<16x128xf32>
      %cst_32 = arith.constant 1.000000e+00 : f32
      %62 = vector.broadcast %cst_32 : f32 to vector<16x128xf32>
      %63 = arith.addf %61, %62 : vector<16x128xf32>
      %cst_33 = arith.constant 5.000000e-01 : f32
      %64 = vector.broadcast %cst_33 : f32 to vector<16x128xf32>
      %65 = arith.mulf %64, %63 : vector<16x128xf32>
      %66 = arith.mulf %55, %arg12 : vector<16x128xf32>
      %67 = arith.mulf %47, %57 : vector<16x128xf32>
      %68 = arith.addf %66, %67 : vector<16x128xf32>
      %69 = math.tanh %68 : vector<16x128xf32>
      %70 = arith.mulf %65, %69 : vector<16x128xf32>
      %71 = vector.extract_strided_slice %39 {offsets = [0, 0], sizes = [16, 128], strides = [1, 1]} : vector<16x512xf32> to vector<16x128xf32>
      %cst_34 = arith.constant 5.000000e-01 : f32
      %72 = vector.broadcast %cst_34 : f32 to vector<16x128xf32>
      %73 = arith.mulf %72, %71 : vector<16x128xf32>
      %74 = math.tanh %73 : vector<16x128xf32>
      %cst_35 = arith.constant 1.000000e+00 : f32
      %75 = vector.broadcast %cst_35 : f32 to vector<16x128xf32>
      %76 = arith.addf %74, %75 : vector<16x128xf32>
      %cst_36 = arith.constant 5.000000e-01 : f32
      %77 = vector.broadcast %cst_36 : f32 to vector<16x128xf32>
      %78 = arith.mulf %77, %76 : vector<16x128xf32>
      %79 = vector.extract_strided_slice %39 {offsets = [0, 128], sizes = [16, 128], strides = [1, 1]} : vector<16x512xf32> to vector<16x128xf32>
      %cst_37 = arith.constant 5.000000e-01 : f32
      %80 = vector.broadcast %cst_37 : f32 to vector<16x128xf32>
      %81 = arith.mulf %80, %79 : vector<16x128xf32>
      %82 = math.tanh %81 : vector<16x128xf32>
      %cst_38 = arith.constant 1.000000e+00 : f32
      %83 = vector.broadcast %cst_38 : f32 to vector<16x128xf32>
      %84 = arith.addf %82, %83 : vector<16x128xf32>
      %cst_39 = arith.constant 5.000000e-01 : f32
      %85 = vector.broadcast %cst_39 : f32 to vector<16x128xf32>
      %86 = arith.mulf %85, %84 : vector<16x128xf32>
      %87 = vector.extract_strided_slice %39 {offsets = [0, 256], sizes = [16, 128], strides = [1, 1]} : vector<16x512xf32> to vector<16x128xf32>
      %88 = math.tanh %87 : vector<16x128xf32>
      %89 = vector.extract_strided_slice %39 {offsets = [0, 384], sizes = [16, 128], strides = [1, 1]} : vector<16x512xf32> to vector<16x128xf32>
      %cst_40 = arith.constant 5.000000e-01 : f32
      %90 = vector.broadcast %cst_40 : f32 to vector<16x128xf32>
      %91 = arith.mulf %90, %89 : vector<16x128xf32>
      %92 = math.tanh %91 : vector<16x128xf32>
      %cst_41 = arith.constant 1.000000e+00 : f32
      %93 = vector.broadcast %cst_41 : f32 to vector<16x128xf32>
      %94 = arith.addf %92, %93 : vector<16x128xf32>
      %cst_42 = arith.constant 5.000000e-01 : f32
      %95 = vector.broadcast %cst_42 : f32 to vector<16x128xf32>
      %96 = arith.mulf %95, %94 : vector<16x128xf32>
      %97 = arith.mulf %86, %arg14 : vector<16x128xf32>
      %98 = arith.mulf %78, %88 : vector<16x128xf32>
      %99 = arith.addf %97, %98 : vector<16x128xf32>
      %100 = math.tanh %99 : vector<16x128xf32>
      %101 = arith.mulf %96, %100 : vector<16x128xf32>
      %102 = arith.truncf %70 : vector<16x128xf32> to vector<16x128xbf16>
      %103 = arith.index_cast %arg10 : i32 to index
      %c0_43 = arith.constant 0 : index
      %c0_44 = arith.constant 0 : index
      %104 = vector.load %arg6[%103, %c0_43, %c0_44] : memref<8x16x128xbf16, #tpu.memory_space<vmem>>, vector<1x16x128xbf16>
      %105 = vector.shape_cast %104 : vector<1x16x128xbf16> to vector<16x128xbf16>
      %106 = vector.shape_cast %102 : vector<16x128xbf16> to vector<1x16x128xbf16>
      tpu.vector_store %arg6[%103, %c0_43, %c0_44], %106 {strides = array<i32>} : memref<8x16x128xbf16, #tpu.memory_space<vmem>>, vector<1x16x128xbf16>,
      %107 = arith.truncf %101 : vector<16x128xf32> to vector<16x128xbf16>
      %108 = arith.index_cast %25 : i32 to index
      %c0_45 = arith.constant 0 : index
      %c0_46 = arith.constant 0 : index
      %109 = vector.load %arg7[%108, %c0_45, %c0_46] : memref<8x16x128xbf16, #tpu.memory_space<vmem>>, vector<1x16x128xbf16>
      %110 = vector.shape_cast %109 : vector<1x16x128xbf16> to vector<16x128xbf16>
      %111 = vector.shape_cast %107 : vector<16x128xbf16> to vector<1x16x128xbf16>
      tpu.vector_store %arg7[%108, %c0_45, %c0_46], %111 {strides = array<i32>} : memref<8x16x128xbf16, #tpu.memory_space<vmem>>, vector<1x16x128xbf16>,
      scf.yield %70, %68, %101, %99 : vector<16x128xf32>, vector<16x128xf32>, vector<16x128xf32>, vector<16x128xf32>
    }
    %c8_i32_18 = arith.constant 8 : i32
    return
  }
  func.func @transform_0(%arg0: i32) -> (i32, i32, i32) {
    %c0_i32 = arith.constant 0 : i32
    %c0_i32_0 = arith.constant 0 : i32
    %c0_i32_1 = arith.constant 0 : i32
    return %c0_i32, %arg0, %c0_i32_0 : i32, i32, i32
  }
  func.func @transform_1(%arg0: i32) -> (i32, i32) {
    %c0_i32 = arith.constant 0 : i32
    %c0_i32_0 = arith.constant 0 : i32
    %c0_i32_1 = arith.constant 0 : i32
    return %c0_i32, %c0_i32_0 : i32, i32
  }
  func.func @transform_2(%arg0: i32) -> (i32, i32) {
    %c0_i32 = arith.constant 0 : i32
    %c0_i32_0 = arith.constant 0 : i32
    %c0_i32_1 = arith.constant 0 : i32
    return %c0_i32, %c0_i32_0 : i32, i32
  }
  func.func @transform_3(%arg0: i32) -> (i32, i32) {
    %c0_i32 = arith.constant 0 : i32
    %c0_i32_0 = arith.constant 0 : i32
    %c0_i32_1 = arith.constant 0 : i32
    return %c0_i32, %c0_i32_0 : i32, i32
  }
  func.func @transform_4(%arg0: i32) -> (i32, i32) {
    %c0_i32 = arith.constant 0 : i32
    %c0_i32_0 = arith.constant 0 : i32
    %c0_i32_1 = arith.constant 0 : i32
    return %c0_i32, %c0_i32_0 : i32, i32
  }
  func.func @transform_5(%arg0: i32) -> (i32, i32, i32) {
    %c0_i32 = arith.constant 0 : i32
    %c0_i32_0 = arith.constant 0 : i32
    %c0_i32_1 = arith.constant 0 : i32
    return %c0_i32, %arg0, %c0_i32_0 : i32, i32, i32
  }
  func.func @transform_6(%arg0: i32) -> (i32, i32, i32) {
    %c0_i32 = arith.constant 0 : i32
    %c0_i32_0 = arith.constant 0 : i32
    %c0_i32_1 = arith.constant 0 : i32
    return %c0_i32, %arg0, %c0_i32_0 : i32, i32, i32
  }
}

module attributes {stable_mosaic.version = 11 : i64} {
  func.func @_fc_logsoftmax_kernel(%arg0: i32, %arg1: i32, %arg2: memref<8x16x128xbf16, #tpu.memory_space<vmem>>, %arg3: memref<8x16x128xbf16, #tpu.memory_space<vmem>>, %arg4: memref<128x128xbf16, #tpu.memory_space<vmem>>, %arg5: memref<128x128xbf16, #tpu.memory_space<vmem>>, %arg6: memref<1x128xf32, #tpu.memory_space<vmem>>, %arg7: memref<8x16x128xf32, #tpu.memory_space<vmem>>) attributes {dimension_semantics = [#tpu.dimension_semantics<parallel>, #tpu.dimension_semantics<parallel>], iteration_bounds = array<i64: 1, 1>, scalar_prefetch = 0 : i64, scratch_operands = 0 : i64, tpu.core_type = #tpu.core_type<tc>, window_params = [{transform_indices = @transform_0, window_bounds = array<i64: 8, 16, 128>}, {transform_indices = @transform_1, window_bounds = array<i64: 8, 16, 128>}, {pipeline_mode = #tpu.pipeline_mode<synchronous>, transform_indices = @transform_2, window_bounds = array<i64: 128, 128>}, {pipeline_mode = #tpu.pipeline_mode<synchronous>, transform_indices = @transform_3, window_bounds = array<i64: 128, 128>}, {pipeline_mode = #tpu.pipeline_mode<synchronous>, transform_indices = @transform_4, window_bounds = array<i64: 1, 128>}, {transform_indices = @transform_5, window_bounds = array<i64: 8, 16, 128>}]} {
    %c0 = arith.constant 0 : index
    %c0_0 = arith.constant 0 : index
    %c0_1 = arith.constant 0 : index
    %0 = vector.load %arg2[%c0, %c0_0, %c0_1] : memref<8x16x128xbf16, #tpu.memory_space<vmem>>, vector<8x16x128xbf16>
    %1 = vector.shape_cast %0 : vector<8x16x128xbf16> to vector<128x128xbf16>
    %c0_2 = arith.constant 0 : index
    %c0_3 = arith.constant 0 : index
    %c0_4 = arith.constant 0 : index
    %2 = vector.load %arg3[%c0_2, %c0_3, %c0_4] : memref<8x16x128xbf16, #tpu.memory_space<vmem>>, vector<8x16x128xbf16>
    %3 = vector.shape_cast %2 : vector<8x16x128xbf16> to vector<128x128xbf16>
    %c0_5 = arith.constant 0 : index
    %c0_6 = arith.constant 0 : index
    %4 = vector.load %arg4[%c0_5, %c0_6] : memref<128x128xbf16, #tpu.memory_space<vmem>>, vector<128x128xbf16>
    %cst = arith.constant dense<0.000000e+00> : vector<128x128xf32>
    %5 = tpu.matmul %1, %4, %cst {dimension_numbers = #tpu.dot_dimension_numbers<[1], [0], [0], [1], [0, 0, 1, 1], [], []>} : vector<128x128xbf16>, vector<128x128xbf16>, vector<128x128xf32> -> vector<128x128xf32>
    %c0_7 = arith.constant 0 : index
    %c0_8 = arith.constant 0 : index
    %6 = vector.load %arg5[%c0_7, %c0_8] : memref<128x128xbf16, #tpu.memory_space<vmem>>, vector<128x128xbf16>
    %cst_9 = arith.constant dense<0.000000e+00> : vector<128x128xf32>
    %7 = tpu.matmul %3, %6, %cst_9 {dimension_numbers = #tpu.dot_dimension_numbers<[1], [0], [0], [1], [0, 0, 1, 1], [], []>} : vector<128x128xbf16>, vector<128x128xbf16>, vector<128x128xf32> -> vector<128x128xf32>
    %8 = arith.addf %5, %7 : vector<128x128xf32>
    %c0_10 = arith.constant 0 : index
    %c0_11 = arith.constant 0 : index
    %9 = vector.load %arg6[%c0_10, %c0_11] : memref<1x128xf32, #tpu.memory_space<vmem>>, vector<1x128xf32>
    %10 = vector.broadcast %9 : vector<1x128xf32> to vector<128x128xf32>
    %11 = arith.addf %8, %10 : vector<128x128xf32>
    %cst_12 = arith.constant dense<0xFF800000> : vector<128xf32>
    %12 = vector.multi_reduction <maximumf>, %11, %cst_12 [1] : vector<128x128xf32> to vector<128xf32>
    %13 = vector.shape_cast %12 : vector<128xf32> to vector<128x1xf32>
    %14 = vector.broadcast %13 : vector<128x1xf32> to vector<128x128xf32>
    %15 = arith.subf %11, %14 : vector<128x128xf32>
    %16 = math.exp %15 : vector<128x128xf32>
    %cst_13 = arith.constant dense<0.000000e+00> : vector<128xf32>
    %17 = vector.multi_reduction <add>, %16, %cst_13 [1] : vector<128x128xf32> to vector<128xf32>
    %18 = vector.shape_cast %17 : vector<128xf32> to vector<128x1xf32>
    %19 = math.log %18 : vector<128x1xf32>
    %20 = arith.addf %13, %19 : vector<128x1xf32>
    %21 = vector.broadcast %20 : vector<128x1xf32> to vector<128x128xf32>
    %22 = arith.subf %11, %21 : vector<128x128xf32>
    %23 = vector.shape_cast %22 : vector<128x128xf32> to vector<8x16x128xf32>
    %c0_14 = arith.constant 0 : index
    %c0_15 = arith.constant 0 : index
    %c0_16 = arith.constant 0 : index
    %24 = vector.load %arg7[%c0_14, %c0_15, %c0_16] : memref<8x16x128xf32, #tpu.memory_space<vmem>>, vector<8x16x128xf32>
    tpu.vector_store %arg7[%c0_14, %c0_15, %c0_16], %23 {strides = array<i32>} : memref<8x16x128xf32, #tpu.memory_space<vmem>>, vector<8x16x128xf32>,
    return
  }
  func.func @transform_0(%arg0: i32, %arg1: i32) -> (i32, i32, i32) {
    %c0_i32 = arith.constant 0 : i32
    %c0_i32_0 = arith.constant 0 : i32
    return %arg1, %arg0, %c0_i32 : i32, i32, i32
  }
  func.func @transform_1(%arg0: i32, %arg1: i32) -> (i32, i32, i32) {
    %c0_i32 = arith.constant 0 : i32
    %c0_i32_0 = arith.constant 0 : i32
    return %arg1, %arg0, %c0_i32 : i32, i32, i32
  }
  func.func @transform_2(%arg0: i32, %arg1: i32) -> (i32, i32) {
    %c0_i32 = arith.constant 0 : i32
    %c0_i32_0 = arith.constant 0 : i32
    %c0_i32_1 = arith.constant 0 : i32
    return %c0_i32, %c0_i32_0 : i32, i32
  }
  func.func @transform_3(%arg0: i32, %arg1: i32) -> (i32, i32) {
    %c0_i32 = arith.constant 0 : i32
    %c0_i32_0 = arith.constant 0 : i32
    %c0_i32_1 = arith.constant 0 : i32
    return %c0_i32, %c0_i32_0 : i32, i32
  }
  func.func @transform_4(%arg0: i32, %arg1: i32) -> (i32, i32) {
    %c0_i32 = arith.constant 0 : i32
    %c0_i32_0 = arith.constant 0 : i32
    %c0_i32_1 = arith.constant 0 : i32
    return %c0_i32, %c0_i32_0 : i32, i32
  }
  func.func @transform_5(%arg0: i32, %arg1: i32) -> (i32, i32, i32) {
    %c0_i32 = arith.constant 0 : i32
    %c0_i32_0 = arith.constant 0 : i32
    return %arg1, %arg0, %c0_i32 : i32, i32, i32
  }
}

</mosaic_0001>

<bundles_post_ra>
// kernel: text_head_ctc.3
= control target key start
LH: loop header
LB: loop body
LE: loop exit
PB: predicated region body
PF: predicated region fallthrough
CT: control target
= control target key end

     0   :  { %s1270_s3 = inlined_call_operand.vmem [shape: bf16[128,128], index: 3, kind: input, shape index: {}]   ;;  %s1271_s2 = inlined_call_operand.vmem [shape: bf16[128,128], index: 2, kind: input, shape index: {}]   ;;  %s1272_s1 = inlined_call_operand.vmem [shape: bf16[8,16,128], index: 1, kind: input, shape index: {}]   ;;  %s1273_s0 = inlined_call_operand.vmem [shape: bf16[8,16,128], index: 0, kind: input, shape index: {}]   ;;  %s1274_s4 = inlined_call_operand.vmem [shape: f32[1,128], index: 4, kind: input, shape index: {}]   ;;  %s1275_s5 = inlined_call_operand.vmem [shape: f32[8,16,128], index: 5, kind: output, shape index: {}]  }
   0x1   :  { %v835_v0 = vld [vmem:[%s1270_s3] sm:$0xff]   ;;  %v837_v2 = vld [vmem:[%s1270_s3 + $0x8] sm:$0xff]   ;;  %v839_v4 = vld [vmem:[%s1270_s3 + $0x10] sm:$0xff]  }
   0x2   :  { %v836_v1 = vld [vmem:[%s1271_s2] sm:$0xff]   ;;  %755 = vmatprep.subr.bf16.mxu1 %v835_v0  ;;  %v838_v3 = vld [vmem:[%s1271_s2 + $0x8] sm:$0xff]   ;;  %v840_v5 = vld [vmem:[%s1271_s2 + $0x10] sm:$0xff]  }
   0x3   :  { %787 = vmatprep.subr.bf16.mxu0 %v836_v1  ;;  %756 = vmatpush3.bf16.msra.mxu1 %v835_v0  ;;  %v841_v6 = vld [vmem:[%s1270_s3 + $0x18] sm:$0xff]   ;;  %v843_v8 = vld [vmem:[%s1270_s3 + $0x20] sm:$0xff]   ;;  %v845_v10 = vld [vmem:[%s1270_s3 + $0x28] sm:$0xff]  }
   0x4   :  { %788 = vmatpush3.bf16.msra.mxu0 %v836_v1  ;;  %757 = vmatprep.subr.bf16.mxu1 %v837_v2  ;;  %v842_v7 = vld [vmem:[%s1271_s2 + $0x18] sm:$0xff]   ;;  %v844_v9 = vld [vmem:[%s1271_s2 + $0x20] sm:$0xff]   ;;  %v846_v11 = vld [vmem:[%s1271_s2 + $0x28] sm:$0xff]  }
   0x5   :  { %789 = vmatprep.subr.bf16.mxu0 %v838_v3  ;;  %v851_v12 = vld [vmem:[%s1272_s1] sm:$0xff]   ;;  %v847_v14 = vld [vmem:[%s1270_s3 + $0x30] sm:$0xff]   ;;  %v849_v16 = vld [vmem:[%s1270_s3 + $0x38] sm:$0xff]  }
   0x6   :  { %v852_v13 = vld [vmem:[%s1273_s0] sm:$0xff]   ;;  %771 = vmatprep.mubr.bf16.mxu1 %v851_v12  ;;  %v848_v15 = vld [vmem:[%s1271_s2 + $0x30] sm:$0xff]   ;;  %v850_v17 = vld [vmem:[%s1271_s2 + $0x38] sm:$0xff]  }
   0x7   :  { %758 = vmatpush3.bf16.msra.mxu1 %v837_v2  ;;  %803 = vmatprep.mubr.bf16.mxu0 %v852_v13  ;;  %v853_v18 = vld [vmem:[%s1272_s1 + $0x8] sm:$0xff]   ;;  %v855_v20 = vld [vmem:[%s1272_s1 + $0x10] sm:$0xff]   ;;  %v857_v22 = vld [vmem:[%s1272_s1 + $0x18] sm:$0xff]  }
   0x8   :  { %790 = vmatpush3.bf16.msra.mxu0 %v838_v3  ;;  %759 = vmatprep.subr.bf16.mxu1 %v839_v4  ;;  %v854_v19 = vld [vmem:[%s1273_s0 + $0x8] sm:$0xff]   ;;  %v856_v21 = vld [vmem:[%s1273_s0 + $0x10] sm:$0xff]   ;;  %v858_v23 = vld [vmem:[%s1273_s0 + $0x18] sm:$0xff]  }
   0x9   :  { %791 = vmatprep.subr.bf16.mxu0 %v840_v5  ;;  %v859_v24 = vld [vmem:[%s1272_s1 + $0x20] sm:$0xff]   ;;  %v861_v26 = vld [vmem:[%s1272_s1 + $0x28] sm:$0xff]   ;;  %v863_v28 = vld [vmem:[%s1272_s1 + $0x30] sm:$0xff]  }
   0xa   :  { %v860_v25 = vld [vmem:[%s1273_s0 + $0x20] sm:$0xff]   ;;  %v862_v27 = vld [vmem:[%s1273_s0 + $0x28] sm:$0xff]   ;;  %v864_v29 = vld [vmem:[%s1273_s0 + $0x30] sm:$0xff]  }
   0xb   :  { %760 = vmatpush3.bf16.msra.mxu1 %v839_v4  ;;  %v865_v30 = vld [vmem:[%s1272_s1 + $0x38] sm:$0xff]   ;;  %v1060_v34 = vld [vmem:[%s1274_s4] ss:$0 sm:$0xff] }
   0xc   :  { %792 = vmatpush3.bf16.msra.mxu0 %v840_v5  ;;  %761 = vmatprep.subr.bf16.mxu1 %v841_v6  ;;  %v866_v31 = vld [vmem:[%s1273_s0 + $0x38] sm:$0xff]  }
   0xd   :  { %793 = vmatprep.subr.bf16.mxu0 %v842_v7 }
   0xf   :  { %762 = vmatpush3.bf16.msra.mxu1 %v841_v6 }
  0x10   :  { %794 = vmatpush3.bf16.msra.mxu0 %v842_v7  ;;  %763 = vmatprep.subr.bf16.mxu1 %v843_v8 }
  0x11   :  { %795 = vmatprep.subr.bf16.mxu0 %v844_v9 }
  0x13   :  { %764 = vmatpush3.bf16.msra.mxu1 %v843_v8 }
  0x14   :  { %796 = vmatpush3.bf16.msra.mxu0 %v844_v9  ;;  %765 = vmatprep.subr.bf16.mxu1 %v845_v10 }
  0x15   :  { %797 = vmatprep.subr.bf16.mxu0 %v846_v11 }
  0x17   :  { %766 = vmatpush3.bf16.msra.mxu1 %v845_v10 }
  0x18   :  { %798 = vmatpush3.bf16.msra.mxu0 %v846_v11  ;;  %767 = vmatprep.subr.bf16.mxu1 %v847_v14 }
  0x19   :  { %799 = vmatprep.subr.bf16.mxu0 %v848_v15 }
  0x1b   :  { %768 = vmatpush3.bf16.msra.mxu1 %v847_v14 }
  0x1c   :  { %800 = vmatpush3.bf16.msra.mxu0 %v848_v15  ;;  %769 = vmatprep.subr.bf16.mxu1 %v849_v16 }
  0x1d   :  { %801 = vmatprep.subr.bf16.mxu0 %v850_v17 }
  0x1f   :  { %770 = vmatpush3.bf16.msra.mxu1 %v849_v16 }
  0x20   :  { %802 = vmatpush3.bf16.msra.mxu0 %v850_v17 }
  0x22   :  { %772 = vmatmul.mubr.bf16.vlgmr.msra.gmra.mrb[0].mxu1 %v853_v18 }
  0x23   :  { %804 = vmatmul.mubr.bf16.vlgmr.msra.gmra.mrb[0].mxu0 %v854_v19  ;;  %775 = vmatprep.mubr.bf16.mxu1 %v855_v20 }
  0x24   :  { %807 = vmatprep.mubr.bf16.mxu0 %v856_v21 }
  0x2a   :  { %776 = vmatmul.mubr.bf16.gmra.mrb[4].mxu1 %v857_v22 }
  0x2b   :  { %808 = vmatmul.mubr.bf16.gmra.mrb[4].mxu0 %v858_v23  ;;  %779 = vmatprep.mubr.bf16.mxu1 %v859_v24 }
  0x2c   :  { %811 = vmatprep.mubr.bf16.mxu0 %v860_v25 }
  0x32   :  { %780 = vmatmul.mubr.bf16.gmra.mrb[8].mxu1 %v861_v26 }
  0x33   :  { %812 = vmatmul.mubr.bf16.gmra.mrb[8].mxu0 %v862_v27  ;;  %783 = vmatprep.mubr.bf16.mxu1 %v863_v28 }
  0x34   :  { %815 = vmatprep.mubr.bf16.mxu0 %v864_v29 }
  0x3a   :  { %784 = vmatmul.mubr.bf16.gmra.mrb[12].mxu1 %v865_v30 }
  0x3b   :  { %816 = vmatmul.mubr.bf16.gmra.mrb[12].mxu0 %v866_v31 }
  0xf5   :  { %v773_v32 = vpop.f32.mrb[0].mxu1 }
  0xf6   :  { %v805_v33 = vpop.f32.mrb[0].mxu0  ;;  %v215_v35 = vpop.f32.mrb[1].mxu1 }
  0xf7   :  { %v417_v36 = vadd.f32 %v805_v33, %v773_v32  ;;  %v408_v37 = vpop.f32.mrb[1].mxu0  ;;  %v774_v38 = vpop.f32.mrb[2].mxu1 }
  0xf8   :  { %v409_v39 = vadd.f32 %v408_v37, %v215_v35  ;;  %v806_v40 = vpop.f32.mrb[2].mxu0  ;;  %v218_v41 = vpop.f32.mrb[3].mxu1 }
  0xf9   :  { %v1063_v42 = vadd.f32 %v1060_v34, %v417_v36  ;;  %v420_v43 = vadd.f32 %v806_v40, %v774_v38  ;;  %v411_v44 = vpop.f32.mrb[3].mxu0 }
  0xfa   :  { %v1066_v45 = vadd.f32 %v1060_v34, %v409_v39  ;;  %v412_v46 = vadd.f32 %v411_v44, %v218_v41 }
  0xfb   :  { %498 = vmax.xlane.f32.xlu1 %v1063_v42  ;;  %v1071_v47 = vadd.f32 %v1060_v34, %v420_v43 }
  0xfc   :  { %494 = vmax.xlane.f32.xlu0 %v1066_v45  ;;  %v1074_v49 = vadd.f32 %v1060_v34, %v412_v46 }
  0xfd   :  { %v777_v48 = vpop.f32.mrb[4].mxu1 }
  0xfe   :  { %v809_v50 = vpop.f32.mrb[4].mxu0  ;;  %v231_v51 = vpop.f32.mrb[5].mxu1 }
  0xff   :  { %v433_v52 = vadd.f32 %v809_v50, %v777_v48  ;;  %500 = vmax.xlane.f32.xlu1 %v1071_v47  ;;  %v424_v53 = vpop.f32.mrb[5].mxu0  ;;  %v778_v54 = vpop.f32.mrb[6].mxu1 }
 0x100   :  { %v425_v55 = vadd.f32 %v424_v53, %v231_v51  ;;  %v810_v56 = vpop.f32.mrb[6].mxu0  ;;  %496 = vmax.xlane.f32.xlu0 %v1074_v49  ;;  %v234_v57 = vpop.f32.mrb[7].mxu1 }
 0x101   :  { %v1079_v58 = vadd.f32 %v1060_v34, %v433_v52  ;;  %v436_v59 = vadd.f32 %v810_v56, %v778_v54  ;;  %v427_v60 = vpop.f32.mrb[7].mxu0 }
 0x102   :  { %v428_v61 = vadd.f32 %v427_v60, %v234_v57  ;;  %v1087_v0 = vadd.f32 %v1060_v34, %v425_v55 }
 0x103   :  { %v1082_v62 = vadd.f32 %v1060_v34, %v436_v59 }
 0x104   :  { %506 = vmax.xlane.f32.xlu0 %v1079_v58  ;;  %v1090_v3 = vadd.f32 %v1060_v34, %v428_v61 }
 0x105   :  { %508 = vmax.xlane.f32.xlu1 %v1082_v62  ;;  %v781_v63 = vpop.f32.mrb[8].mxu1 }
 0x106   :  { %v813_v1 = vpop.f32.mrb[8].mxu0  ;;  %v247_v2 = vpop.f32.mrb[9].mxu1 }
 0x107   :  { %v449_v4 = vadd.f32 %v813_v1, %v781_v63  ;;  %v440_v5 = vpop.f32.mrb[9].mxu0  ;;  %v782_v6 = vpop.f32.mrb[10].mxu1 }
 0x108   :  { %v441_v7 = vadd.f32 %v440_v5, %v247_v2  ;;  %v814_v8 = vpop.f32.mrb[10].mxu0  ;;  %502 = vmax.xlane.f32.xlu0 %v1087_v0  ;;  %v250_v9 = vpop.f32.mrb[11].mxu1 }
 0x109   :  { %v1094_v10 = vadd.f32 %v1060_v34, %v449_v4  ;;  %v452_v11 = vadd.f32 %v814_v8, %v782_v6  ;;  %v443_v12 = vpop.f32.mrb[11].mxu0  ;;  %504 = vmax.xlane.f32.xlu1 %v1090_v3 }
 0x10a   :  { %v444_v13 = vadd.f32 %v443_v12, %v250_v9  ;;  %v1103_v16 = vadd.f32 %v1060_v34, %v441_v7 }
 0x10b   :  { %v1098_v14 = vadd.f32 %v1060_v34, %v452_v11 }
 0x10c   :  { %514 = vmax.xlane.f32.xlu0 %v1094_v10  ;;  %v1106_v19 = vadd.f32 %v1060_v34, %v444_v13 }
 0x10d   :  { %516 = vmax.xlane.f32.xlu1 %v1098_v14  ;;  %v785_v15 = vpop.f32.mrb[12].mxu1 }
 0x10e   :  { %v817_v17 = vpop.f32.mrb[12].mxu0  ;;  %v263_v18 = vpop.f32.mrb[13].mxu1 }
 0x10f   :  { %v465_v20 = vadd.f32 %v817_v17, %v785_v15  ;;  %v456_v21 = vpop.f32.mrb[13].mxu0  ;;  %v786_v22 = vpop.f32.mrb[14].mxu1 }
 0x110   :  { %v457_v23 = vadd.f32 %v456_v21, %v263_v18  ;;  %v818_v24 = vpop.f32.mrb[14].mxu0  ;;  %510 = vmax.xlane.f32.xlu0 %v1103_v16  ;;  %v266_v25 = vpop.f32.mrb[15].mxu1 }
 0x111   :  { %v468_v26 = vadd.f32 %v818_v24, %v786_v22  ;;  %v459_v27 = vpop.f32.mrb[15].mxu0  ;;  %512 = vmax.xlane.f32.xlu1 %v1106_v19  ;;  %v1118_v31 = vadd.f32 %v1060_v34, %v465_v20 }
 0x112   :  { %v1111_v28 = vadd.f32 %v1060_v34, %v457_v23  ;;  %v460_v29 = vadd.f32 %v459_v27, %v266_v25 }
 0x113   :  { %v1122_v32 = vadd.f32 %v1060_v34, %v468_v26 }
 0x114   :  { %v1114_v30 = vadd.f32 %v1060_v34, %v460_v29  ;;  %518 = vmax.xlane.f32.xlu0 %v1111_v28 }
 0x116   :  { %520 = vmax.xlane.f32.xlu1 %v1114_v30 }
 0x118   :  { %522 = vmax.xlane.f32.xlu0 %v1118_v31 }
 0x11a   :  { %524 = vmax.xlane.f32.xlu1 %v1122_v32 }
 0x188   :  { %v1126_v33 = vpop.xlane.xlu1 %498 }
 0x189   :  { %v528_v35 = vsub.f32 %v1063_v42, %v1126_v33  ;;  %v1130_v36 = vpop.xlane.xlu0 %494 }
 0x18a   :  { %v526_v37 = vsub.f32 %v1066_v45, %v1130_v36 }
 0x18b   :  { %v546_v38 = vmul.f32 1.442695, %v528_v35 }
 0x18c   :  { %v542_v39 = vmul.f32 1.442695, %v526_v37  ;;  %v1134_v40 = vpop.xlane.xlu1 %500 }
 0x18d   :  { %867 = vpow2.f32 %v546_v38  ;;  %v529_v34 = vsub.f32 %v1071_v47, %v1134_v40  ;;  %v1138_v41 = vpop.xlane.xlu0 %496 }
 0x18e   :  { %v527_v43 = vsub.f32 %v1074_v49, %v1138_v41  ;;  %869 = vpow2.f32 %v542_v39 }
 0x18f   :  { %v548_v44 = vmul.f32 1.442695, %v529_v34 }
 0x190   :  { %v544_v46 = vmul.f32 1.442695, %v527_v43 }
 0x191   :  { %871 = vpow2.f32 %v548_v44  ;;  %v1142_v48 = vpop.xlane.xlu0 %506 }
 0x192   :  { %v532_v50 = vsub.f32 %v1079_v58, %v1142_v48  ;;  %v1146_v51 = vpop.xlane.xlu1 %508  ;;  %873 = vpow2.f32 %v544_v46 }
 0x193   :  { %v533_v52 = vsub.f32 %v1082_v62, %v1146_v51 }
 0x194   :  { %v554_v53 = vmul.f32 1.442695, %v532_v50 }
 0x195   :  { %v556_v54 = vmul.f32 1.442695, %v533_v52  ;;  %v1150_v55 = vpop.xlane.xlu0 %502 }
 0x196   :  { %875 = vpow2.f32 %v554_v53  ;;  %v530_v56 = vsub.f32 %v1087_v0, %v1150_v55  ;;  %v1154_v57 = vpop.xlane.xlu1 %504 }
 0x197   :  { %v868_v59 = vpop.eup %867  ;;  %v531_v60 = vsub.f32 %v1090_v3, %v1154_v57  ;;  %877 = vpow2.f32 %v556_v54 }
 0x198   :  { %v550_v61 = vmul.f32 1.442695, %v530_v56  ;;  %578 = vadd.xlane.f32.xlu0 %v868_v59  ;;  %v870_v2 = vpop.eup %869 }
 0x199   :  { %v552_v63 = vmul.f32 1.442695, %v531_v60  ;;  %v1158_v1 = vpop.xlane.xlu0 %514 }
 0x19a   :  { %879 = vpow2.f32 %v550_v61  ;;  %v536_v4 = vsub.f32 %v1094_v10, %v1158_v1  ;;  %v1162_v5 = vpop.xlane.xlu1 %516 }
 0x19b   :  { %v872_v6 = vpop.eup %871  ;;  %v537_v7 = vsub.f32 %v1098_v14, %v1162_v5  ;;  %881 = vpow2.f32 %v552_v63 }
 0x19c   :  { %v562_v8 = vmul.f32 1.442695, %v536_v4  ;;  %580 = vadd.xlane.f32.xlu1 %v872_v6  ;;  %574 = vadd.xlane.f32.xlu0 %v870_v2  ;;  %v874_v15 = vpop.eup %873 }
 0x19d   :  { %v564_v9 = vmul.f32 1.442695, %v537_v7  ;;  %v1166_v11 = vpop.xlane.xlu0 %510 }
 0x19e   :  { %883 = vpow2.f32 %v562_v8  ;;  %v534_v12 = vsub.f32 %v1103_v16, %v1166_v11  ;;  %v1170_v13 = vpop.xlane.xlu1 %512 }
 0x19f   :  { %v535_v17 = vsub.f32 %v1106_v19, %v1170_v13  ;;  %885 = vpow2.f32 %v564_v9 }
 0x1a0   :  { %v876_v18 = vpop.eup %875  ;;  %v558_v20 = vmul.f32 1.442695, %v534_v12  ;;  %576 = vadd.xlane.f32.xlu1 %v874_v15 }
 0x1a1   :  { %v560_v21 = vmul.f32 1.442695, %v535_v17  ;;  %586 = vadd.xlane.f32.xlu0 %v876_v18  ;;  %v1174_v22 = vpop.xlane.xlu0 %518  ;;  %v878_v24 = vpop.eup %877 }
 0x1a2   :  { %887 = vpow2.f32 %v558_v20  ;;  %v538_v23 = vsub.f32 %v1111_v28, %v1174_v22 }
 0x1a3   :  { %v1178_v25 = vpop.xlane.xlu1 %520  ;;  %889 = vpow2.f32 %v560_v21 }
 0x1a4   :  { %v880_v26 = vpop.eup %879  ;;  %v566_v27 = vmul.f32 1.442695, %v538_v23  ;;  %v539_v29 = vsub.f32 %v1114_v30, %v1178_v25  ;;  %588 = vadd.xlane.f32.xlu1 %v878_v24 }
 0x1a5   :  { %582 = vadd.xlane.f32.xlu0 %v880_v26  ;;  %v1182_v35 = vpop.xlane.xlu0 %522  ;;  %v882_v39 = vpop.eup %881 }
 0x1a6   :  { %891 = vpow2.f32 %v566_v27  ;;  %v568_v37 = vmul.f32 1.442695, %v539_v29  ;;  %v540_v38 = vsub.f32 %v1118_v31, %v1182_v35 }
 0x1a7   :  { %v1186_v34 = vpop.xlane.xlu1 %524 }
 0x1a8   :  { %v884_v43 = vpop.eup %883  ;;  %893 = vpow2.f32 %v568_v37  ;;  %v570_v44 = vmul.f32 1.442695, %v540_v38  ;;  %v541_v46 = vsub.f32 %v1122_v32, %v1186_v34  ;;  %584 = vadd.xlane.f32.xlu1 %v882_v39 }
 0x1a9   :  { %594 = vadd.xlane.f32.xlu0 %v884_v43  ;;  %v886_v52 = vpop.eup %885 }
 0x1aa   :  { %895 = vpow2.f32 %v570_v44  ;;  %v572_v50 = vmul.f32 1.442695, %v541_v46 }
 0x1ac   :  { %v888_v53 = vpop.eup %887  ;;  %897 = vpow2.f32 %v572_v50  ;;  %596 = vadd.xlane.f32.xlu1 %v886_v52 }
 0x1ad   :  { %590 = vadd.xlane.f32.xlu0 %v888_v53  ;;  %v890_v54 = vpop.eup %889 }
 0x1b0   :  { %v892_v56 = vpop.eup %891  ;;  %592 = vadd.xlane.f32.xlu1 %v890_v54 }
 0x1b1   :  { %598 = vadd.xlane.f32.xlu0 %v892_v56 }
 0x1b2   :  { %v894_v59 = vpop.eup %893 }
 0x1b4   :  { %v896_v60 = vpop.eup %895  ;;  %600 = vadd.xlane.f32.xlu1 %v894_v59 }
 0x1b5   :  { %602 = vadd.xlane.f32.xlu0 %v896_v60 }
 0x1b6   :  { %v898_v61 = vpop.eup %897 }
 0x1b8   :  { %604 = vadd.xlane.f32.xlu1 %v898_v61 }
 0x225   :  { %v579_v63 = vpop.xlane.xlu0 %578 }
 0x226   :  { %899 = vlog2.f32 %v579_v63 }
 0x229   :  { %v581_v2 = vpop.xlane.xlu1 %580  ;;  %v575_v4 = vpop.xlane.xlu0 %574 }
 0x22a   :  { %901 = vlog2.f32 %v581_v2 }
 0x22b   :  { %903 = vlog2.f32 %v575_v4 }
 0x22d   :  { %v577_v6 = vpop.xlane.xlu1 %576 }
 0x22e   :  { %905 = vlog2.f32 %v577_v6  ;;  %v587_v7 = vpop.xlane.xlu0 %586 }
 0x22f   :  { %907 = vlog2.f32 %v587_v7 }
 0x230   :  { %v900_v8 = vpop.eup %899 }
 0x231   :  { %v611_v9 = vmul.f32 0.6931472, %v900_v8  ;;  %v589_v12 = vpop.xlane.xlu1 %588 }
 0x232   :  { %909 = vlog2.f32 %v589_v12  ;;  %v583_v15 = vpop.xlane.xlu0 %582 }
 0x233   :  { %v640_v17 = vadd.f32 %v611_v9, %v1126_v33  ;;  %911 = vlog2.f32 %v583_v15 }
 0x234   :  { %v902_v18 = vpop.eup %901 }
 0x235   :  { %v904_v20 = vpop.eup %903  ;;  %v656_v21 = vsub.f32 %v1063_v42, %v640_v17  ;;  %v613_v23 = vmul.f32 0.6931472, %v902_v18  ;;  %v585_v24 = vpop.xlane.xlu1 %584 }
 0x236   :  { %v607_v26 = vmul.f32 0.6931472, %v904_v20  ;;  %913 = vlog2.f32 %v585_v24  ;;  %v595_v27 = vpop.xlane.xlu0 %594 }
 0x237   :  { %672 = vst [vmem:[%s1275_s5 + $0x10] sm:$0xff] %v656_v21  ;;  %v641_v29 = vadd.f32 %v613_v23, %v1134_v40  ;;  %915 = vlog2.f32 %v595_v27 }
 0x238   :  { %v906_v37 = vpop.eup %905  ;;  %v638_v33 = vadd.f32 %v607_v26, %v1130_v36 }
 0x239   :  { %v908_v38 = vpop.eup %907  ;;  %v657_v39 = vsub.f32 %v1071_v47, %v641_v29  ;;  %v609_v43 = vmul.f32 0.6931472, %v906_v37  ;;  %v597_v42 = vpop.xlane.xlu1 %596 }
 0x23a   :  { %v654_v44 = vsub.f32 %v1066_v45, %v638_v33  ;;  %v619_v46 = vmul.f32 0.6931472, %v908_v38  ;;  %917 = vlog2.f32 %v597_v42  ;;  %v591_v50 = vpop.xlane.xlu0 %590 }
 0x23b   :  { %673 = vst [vmem:[%s1275_s5 + $0x18] sm:$0xff] %v657_v39  ;;  %v639_v40 = vadd.f32 %v609_v43, %v1138_v41  ;;  %919 = vlog2.f32 %v591_v50 }
 0x23c   :  { %v910_v52 = vpop.eup %909  ;;  %670 = vst [vmem:[%s1275_s5] sm:$0xff] %v654_v44  ;;  %v644_v47 = vadd.f32 %v619_v46, %v1142_v48 }
 0x23d   :  { %v912_v36 = vpop.eup %911  ;;  %v655_v45 = vsub.f32 %v1074_v49, %v639_v40  ;;  %v621_v53 = vmul.f32 0.6931472, %v910_v52  ;;  %v593_v54 = vpop.xlane.xlu1 %592 }
 0x23e   :  { %v660_v56 = vsub.f32 %v1079_v58, %v644_v47  ;;  %v615_v59 = vmul.f32 0.6931472, %v912_v36  ;;  %921 = vlog2.f32 %v593_v54  ;;  %v599_v60 = vpop.xlane.xlu0 %598 }
 0x23f   :  { %671 = vst [vmem:[%s1275_s5 + $0x8] sm:$0xff] %v655_v45  ;;  %v645_v41 = vadd.f32 %v621_v53, %v1146_v51  ;;  %923 = vlog2.f32 %v599_v60 }
 0x240   :  { %v914_v61 = vpop.eup %913  ;;  %676 = vst [vmem:[%s1275_s5 + $0x30] sm:$0xff] %v660_v56  ;;  %v642_v49 = vadd.f32 %v615_v59, %v1150_v55 }
 0x241   :  { %v916_v48 = vpop.eup %915  ;;  %v661_v58 = vsub.f32 %v1082_v62, %v645_v41  ;;  %v617_v63 = vmul.f32 0.6931472, %v914_v61  ;;  %v601_v2 = vpop.xlane.xlu1 %600 }
 0x242   :  { %v658_v4 = vsub.f32 %v1087_v0, %v642_v49  ;;  %v627_v6 = vmul.f32 0.6931472, %v916_v48  ;;  %925 = vlog2.f32 %v601_v2  ;;  %v603_v7 = vpop.xlane.xlu0 %602 }
 0x243   :  { %677 = vst [vmem:[%s1275_s5 + $0x38] sm:$0xff] %v661_v58  ;;  %v643_v51 = vadd.f32 %v617_v63, %v1154_v57  ;;  %927 = vlog2.f32 %v603_v7 }
 0x244   :  { %v918_v8 = vpop.eup %917  ;;  %674 = vst [vmem:[%s1275_s5 + $0x20] sm:$0xff] %v658_v4  ;;  %v648_v62 = vadd.f32 %v627_v6, %v1158_v1 }
 0x245   :  { %v920_v55 = vpop.eup %919  ;;  %v659_v0 = vsub.f32 %v1090_v3, %v643_v51  ;;  %v629_v9 = vmul.f32 0.6931472, %v918_v8  ;;  %v605_v12 = vpop.xlane.xlu1 %604 }
 0x246   :  { %v664_v15 = vsub.f32 %v1094_v10, %v648_v62  ;;  %v623_v17 = vmul.f32 0.6931472, %v920_v55  ;;  %929 = vlog2.f32 %v605_v12 }
 0x247   :  { %675 = vst [vmem:[%s1275_s5 + $0x28] sm:$0xff] %v659_v0  ;;  %v649_v57 = vadd.f32 %v629_v9, %v1162_v5 }
 0x248   :  { %v922_v18 = vpop.eup %921  ;;  %680 = vst [vmem:[%s1275_s5 + $0x50] sm:$0xff] %v664_v15  ;;  %v646_v1 = vadd.f32 %v623_v17, %v1166_v11 }
 0x249   :  { %v924_v3 = vpop.eup %923  ;;  %v665_v20 = vsub.f32 %v1098_v14, %v649_v57  ;;  %v625_v21 = vmul.f32 0.6931472, %v922_v18 }
 0x24a   :  { %v662_v10 = vsub.f32 %v1103_v16, %v646_v1  ;;  %v631_v23 = vmul.f32 0.6931472, %v924_v3 }
 0x24b   :  { %681 = vst [vmem:[%s1275_s5 + $0x58] sm:$0xff] %v665_v20  ;;  %v647_v5 = vadd.f32 %v625_v21, %v1170_v13 }
 0x24c   :  { %v926_v24 = vpop.eup %925  ;;  %678 = vst [vmem:[%s1275_s5 + $0x40] sm:$0xff] %v662_v10  ;;  %v650_v11 = vadd.f32 %v631_v23, %v1174_v22 }
 0x24d   :  { %v928_v26 = vpop.eup %927  ;;  %v663_v14 = vsub.f32 %v1106_v19, %v647_v5  ;;  %v633_v27 = vmul.f32 0.6931472, %v926_v24 }
 0x24e   :  { %v666_v16 = vsub.f32 %v1111_v28, %v650_v11  ;;  %v635_v29 = vmul.f32 0.6931472, %v928_v26 }
 0x24f   :  { %679 = vst [vmem:[%s1275_s5 + $0x48] sm:$0xff] %v663_v14  ;;  %v651_v13 = vadd.f32 %v633_v27, %v1178_v25 }
 0x250   :  { %v930_v37 = vpop.eup %929  ;;  %682 = vst [vmem:[%s1275_s5 + $0x60] sm:$0xff] %v666_v16  ;;  %v652_v22 = vadd.f32 %v635_v29, %v1182_v35 }
 0x251   :  { %v667_v33 = vsub.f32 %v1114_v30, %v651_v13  ;;  %v637_v19 = vmul.f32 0.6931472, %v930_v37 }
 0x252   :  { %v668_v38 = vsub.f32 %v1118_v31, %v652_v22 }
 0x253   :  { %683 = vst [vmem:[%s1275_s5 + $0x68] sm:$0xff] %v667_v33  ;;  %v653_v28 = vadd.f32 %v637_v19, %v1186_v34 }
 0x254   :  { %684 = vst [vmem:[%s1275_s5 + $0x70] sm:$0xff] %v668_v38 }
 0x255   :  { %v669_v25 = vsub.f32 %v1122_v32, %v653_v28 }
 0x257   :  { %685 = vst [vmem:[%s1275_s5 + $0x78] sm:$0xff] %v669_v25 }

// kernel: text_head_ctc.2
= control target key start
LH: loop header
LB: loop body
LE: loop exit
PB: predicated region body
PF: predicated region fallthrough
CT: control target
= control target key end

     0   :  { %v2215_v3 = vmov 0   ;;  %s3234_s1 = inlined_call_operand.vmem [shape: bf16[128,1024], index: 1, kind: input, shape index: {}]   ;;  %s3235_s5 = inlined_call_operand.vmem [shape: bf16[8,16,128], index: 5, kind: output, shape index: {0}]   ;;  %s3236_s6 = inlined_call_operand.vmem [shape: bf16[8,16,128], index: 6, kind: output, shape index: {1}]   ;;  %s3237_s0 = inlined_call_operand.vmem [shape: bf16[8,16,128], index: 0, kind: input, shape index: {}]   ;;  %s3238_s2 = inlined_call_operand.vmem [shape: f32[1,1024], index: 2, kind: input, shape index: {}]   ;;  %s3239_s3 = inlined_call_operand.vmem [shape: bf16[128,512], index: 3, kind: input, shape index: {}]   ;;  %s3240_s4 = inlined_call_operand.vmem [shape: bf16[128,512], index: 4, kind: input, shape index: {}]  }
   0x1   :  { %v24_v0 = vld [vmem:[%s3234_s1] sm:$0xff]  ;;  %v25_v2 = vld [vmem:[%s3234_s1 + $0x8] sm:$0xff]  ;;  %545 = vmatprep.mubr.bf16.mxu0 %v2215_v3  ;;  %658 = vmatprep.mubr.bf16.mxu1 %v2215_v3  ;;  %v26_v63 = vld [vmem:[%s3234_s1 + $0x10] sm:$0xff] }
   0x2   :  { %v28_v1 = vld [vmem:[%s3234_s1 + $0x20] sm:$0xff]  ;;  %v29_v5 = vld [vmem:[%s3234_s1 + $0x28] sm:$0xff] }
   0x3   :  { %v1864_v4 = vcombine.high %v24_v0, %v28_v1  ;;  %v1863_v6 = vcombine.low %v24_v0, %v28_v1  ;;  %v32_v7 = vld [vmem:[%s3234_s1 + $0x40] sm:$0xff]  ;;  %v1866_v9 = vcombine.high %v25_v2, %v29_v5  ;;  %v1865_v10 = vcombine.low %v25_v2, %v29_v5  ;;  %v33_v12 = vld [vmem:[%s3234_s1 + $0x48] sm:$0xff]  ;;  %v30_v0 = vld [vmem:[%s3234_s1 + $0x30] sm:$0xff] }
   0x4   :  { %v36_v8 = vld [vmem:[%s3234_s1 + $0x60] sm:$0xff]  ;;  %v37_v13 = vld [vmem:[%s3234_s1 + $0x68] sm:$0xff]  ;;  %v27_v1 = vld [vmem:[%s3234_s1 + $0x18] sm:$0xff] }
   0x5   :  { %v1872_v11 = vcombine.high %v32_v7, %v36_v8  ;;  %v40_v14 = vld [vmem:[%s3234_s1 + $0x80] sm:$0xff]  ;;  %513 = vmatprep.subr.bf16.mxu0 %v1864_v4  ;;  %v1874_v15 = vcombine.high %v33_v12, %v37_v13  ;;  %v41_v17 = vld [vmem:[%s3234_s1 + $0x88] sm:$0xff]  ;;  %626 = vmatprep.subr.bf16.mxu1 %v1866_v9  ;;  %v1871_v19 = vcombine.low %v32_v7, %v36_v8  ;;  %v31_v2 = vld [vmem:[%s3234_s1 + $0x38] sm:$0xff] }
   0x6   :  { %v44_v16 = vld [vmem:[%s3234_s1 + $0xa0] sm:$0xff]  ;;  %v45_v18 = vld [vmem:[%s3234_s1 + $0xa8] sm:$0xff]  ;;  %514 = vmatpush1.bf16.msra.mxu0 %v1863_v6  ;;  %627 = vmatpush1.bf16.msra.mxu1 %v1865_v10  ;;  %v1873_v20 = vcombine.low %v33_v12, %v37_v13  ;;  %v1868_v6 = vcombine.high %v26_v63, %v30_v0  ;;  %v1870_v7 = vcombine.high %v27_v1, %v31_v2  ;;  %v34_v9 = vld [vmem:[%s3234_s1 + $0x50] sm:$0xff] }
   0x7   :  { %515 = vmatprep.subr.bf16.mxu0 %v1872_v11  ;;  %v1880_v21 = vcombine.high %v40_v14, %v44_v16  ;;  %628 = vmatprep.subr.bf16.mxu1 %v1874_v15  ;;  %v1882_v22 = vcombine.high %v41_v17, %v45_v18  ;;  %v48_v23 = vld [vmem:[%s3234_s1 + $0xc0] sm:$0xff]  ;;  %v49_v25 = vld [vmem:[%s3234_s1 + $0xc8] sm:$0xff]  ;;  %v1879_v27 = vcombine.low %v40_v14, %v44_v16  ;;  %v38_v10 = vld [vmem:[%s3234_s1 + $0x70] sm:$0xff] }
   0x8   :  { %v52_v24 = vld [vmem:[%s3234_s1 + $0xe0] sm:$0xff]  ;;  %v53_v26 = vld [vmem:[%s3234_s1 + $0xe8] sm:$0xff]  ;;  %v1881_v28 = vcombine.low %v41_v17, %v45_v18  ;;  %v1867_v11 = vcombine.low %v26_v63, %v30_v0  ;;  %v35_v12 = vld [vmem:[%s3234_s1 + $0x58] sm:$0xff]  ;;  %v1869_v14 = vcombine.low %v27_v1, %v31_v2  ;;  %v1876_v15 = vcombine.high %v34_v9, %v38_v10 }
   0x9   :  { %v1888_v29 = vcombine.high %v48_v23, %v52_v24  ;;  %v1890_v30 = vcombine.high %v49_v25, %v53_v26  ;;  %v56_v31 = vld [vmem:[%s3234_s1 + $0x100] sm:$0xff]  ;;  %v57_v33 = vld [vmem:[%s3234_s1 + $0x108] sm:$0xff]  ;;  %v1887_v35 = vcombine.low %v48_v23, %v52_v24  ;;  %v1889_v36 = vcombine.low %v49_v25, %v53_v26  ;;  %v39_v13 = vld [vmem:[%s3234_s1 + $0x78] sm:$0xff] }
   0xa   :  { %516 = vmatpush1.bf16.msra.mxu0 %v1871_v19  ;;  %629 = vmatpush1.bf16.msra.mxu1 %v1873_v20  ;;  %v60_v32 = vld [vmem:[%s3234_s1 + $0x120] sm:$0xff]  ;;  %v61_v34 = vld [vmem:[%s3234_s1 + $0x128] sm:$0xff]  ;;  %v42_v16 = vld [vmem:[%s3234_s1 + $0x90] sm:$0xff]  ;;  %v1878_v18 = vcombine.high %v35_v12, %v39_v13 }
   0xb   :  { %517 = vmatprep.subr.bf16.mxu0 %v1880_v21  ;;  %630 = vmatprep.subr.bf16.mxu1 %v1882_v22  ;;  %v1896_v37 = vcombine.high %v56_v31, %v60_v32  ;;  %v1898_v38 = vcombine.high %v57_v33, %v61_v34  ;;  %v64_v39 = vld [vmem:[%s3234_s1 + $0x140] sm:$0xff]  ;;  %v65_v41 = vld [vmem:[%s3234_s1 + $0x148] sm:$0xff]  ;;  %v1895_v43 = vcombine.low %v56_v31, %v60_v32  ;;  %v46_v17 = vld [vmem:[%s3234_s1 + $0xb0] sm:$0xff] }
   0xc   :  { %v68_v40 = vld [vmem:[%s3234_s1 + $0x160] sm:$0xff]  ;;  %v69_v42 = vld [vmem:[%s3234_s1 + $0x168] sm:$0xff]  ;;  %v1897_v44 = vcombine.low %v57_v33, %v61_v34  ;;  %v43_v19 = vld [vmem:[%s3234_s1 + $0x98] sm:$0xff]  ;;  %v1875_v21 = vcombine.low %v34_v9, %v38_v10  ;;  %v1877_v22 = vcombine.low %v35_v12, %v39_v13  ;;  %v1884_v23 = vcombine.high %v42_v16, %v46_v17 }
   0xd   :  { %v1904_v45 = vcombine.high %v64_v39, %v68_v40  ;;  %v1906_v46 = vcombine.high %v65_v41, %v69_v42  ;;  %v72_v47 = vld [vmem:[%s3234_s1 + $0x180] sm:$0xff]  ;;  %v73_v49 = vld [vmem:[%s3234_s1 + $0x188] sm:$0xff]  ;;  %v1903_v51 = vcombine.low %v64_v39, %v68_v40  ;;  %v1905_v52 = vcombine.low %v65_v41, %v69_v42  ;;  %v47_v20 = vld [vmem:[%s3234_s1 + $0xb8] sm:$0xff] }
   0xe   :  { %518 = vmatpush1.bf16.msra.mxu0 %v1879_v27  ;;  %631 = vmatpush1.bf16.msra.mxu1 %v1881_v28  ;;  %v76_v48 = vld [vmem:[%s3234_s1 + $0x1a0] sm:$0xff]  ;;  %v77_v50 = vld [vmem:[%s3234_s1 + $0x1a8] sm:$0xff]  ;;  %v1886_v24 = vcombine.high %v43_v19, %v47_v20  ;;  %v50_v26 = vld [vmem:[%s3234_s1 + $0xd0] sm:$0xff]  ;;  %v1885_v31 = vcombine.low %v43_v19, %v47_v20 }
   0xf   :  { %519 = vmatprep.subr.bf16.mxu0 %v1888_v29  ;;  %632 = vmatprep.subr.bf16.mxu1 %v1890_v30  ;;  %v1912_v53 = vcombine.high %v72_v47, %v76_v48  ;;  %v80_v54 = vld [vmem:[%s3234_s1 + $0x1c0] sm:$0xff]  ;;  %v1914_v55 = vcombine.high %v73_v49, %v77_v50  ;;  %v81_v57 = vld [vmem:[%s3234_s1 + $0x1c8] sm:$0xff]  ;;  %v1911_v59 = vcombine.low %v72_v47, %v76_v48  ;;  %v54_v27 = vld [vmem:[%s3234_s1 + $0xf0] sm:$0xff] }
  0x10   :  { %v84_v56 = vld [vmem:[%s3234_s1 + $0x1e0] sm:$0xff]  ;;  %v85_v58 = vld [vmem:[%s3234_s1 + $0x1e8] sm:$0xff]  ;;  %v1913_v60 = vcombine.low %v73_v49, %v77_v50  ;;  %v51_v28 = vld [vmem:[%s3234_s1 + $0xd8] sm:$0xff]  ;;  %v1883_v30 = vcombine.low %v42_v16, %v46_v17  ;;  %v1892_v32 = vcombine.high %v50_v26, %v54_v27 }
  0x11   :  { %v1920_v61 = vcombine.high %v80_v54, %v84_v56  ;;  %v1922_v62 = vcombine.high %v81_v57, %v85_v58  ;;  %v1919_v4 = vcombine.low %v80_v54, %v84_v56  ;;  %v1921_v5 = vcombine.low %v81_v57, %v85_v58  ;;  %v2365_v8 = vld [vmem:[%s3237_s0] sm:$0xff]   ;;  %v2398_v25 = vld [vmem:[%s3237_s0 + $0x8] sm:$0xff]   ;;  %v55_v29 = vld [vmem:[%s3234_s1 + $0xf8] sm:$0xff] }
  0x12   :  { %520 = vmatpush1.bf16.msra.mxu0 %v1887_v35  ;;  %633 = vmatpush1.bf16.msra.mxu1 %v1889_v36  ;;  %v1894_v33 = vcombine.high %v51_v28, %v55_v29  ;;  %v58_v34 = vld [vmem:[%s3234_s1 + $0x110] sm:$0xff]  ;;  %v59_v36 = vld [vmem:[%s3234_s1 + $0x118] sm:$0xff]  ;;  %v1893_v39 = vcombine.low %v51_v28, %v55_v29  ;;  %v2100_v9 = vld [vmem:[%s3237_s0 + $0x28] sm:$0xff]  }
  0x13   :  { %521 = vmatprep.subr.bf16.mxu0 %v1896_v37  ;;  %634 = vmatprep.subr.bf16.mxu1 %v1898_v38  ;;  %v62_v35 = vld [vmem:[%s3234_s1 + $0x130] sm:$0xff]  ;;  %v63_v37 = vld [vmem:[%s3234_s1 + $0x138] sm:$0xff]  ;;  %v1891_v38 = vcombine.low %v50_v26, %v54_v27 }
  0x14   :  { %v1900_v40 = vcombine.high %v58_v34, %v62_v35  ;;  %v2431_v41 = vld [vmem:[%s3237_s0 + $0x10] sm:$0xff]   ;;  %v1902_v42 = vcombine.high %v59_v36, %v63_v37  ;;  %v1899_v47 = vcombine.low %v58_v34, %v62_v35  ;;  %v1901_v48 = vcombine.low %v59_v36, %v63_v37  ;;  %v79_v54 = vld [vmem:[%s3234_s1 + $0x1b8] sm:$0xff] }
  0x15   :  { %v2098_v58 = vld [vmem:[%s3237_s0 + $0x18] sm:$0xff]   ;;  %v2101_v10 = vld [vmem:[%s3237_s0 + $0x30] sm:$0xff]  }
  0x16   :  { %522 = vmatpush1.bf16.msra.mxu0 %v1895_v43  ;;  %635 = vmatpush1.bf16.msra.mxu1 %v1897_v44  ;;  %v66_v43 = vld [vmem:[%s3234_s1 + $0x150] sm:$0xff]  ;;  %v87_v63 = vld [vmem:[%s3234_s1 + $0x1f8] sm:$0xff] }
  0x17   :  { %523 = vmatprep.subr.bf16.mxu0 %v1904_v45  ;;  %636 = vmatprep.subr.bf16.mxu1 %v1906_v46  ;;  %v70_v44 = vld [vmem:[%s3234_s1 + $0x170] sm:$0xff]  ;;  %v67_v45 = vld [vmem:[%s3234_s1 + $0x158] sm:$0xff] }
  0x18   :  { %v71_v46 = vld [vmem:[%s3234_s1 + $0x178] sm:$0xff]  ;;  %v1908_v49 = vcombine.high %v66_v43, %v70_v44  ;;  %v2554_v26 = vld [vmem:[%s3239_s3 + $0x10] sm:$0xff] }
  0x19   :  { %v1910_v50 = vcombine.high %v67_v45, %v71_v46  ;;  %v1909_v56 = vcombine.low %v67_v45, %v71_v46  ;;  %3301 = vst [vmem:[#allocation6_spill] sm:$0xff] %v2554_v26  ;;  %v2559_v29 = vld [vmem:[%s3239_s3 + $0x18] sm:$0xff]  ;;  %v2576_v36 = vld [vmem:[%s3239_s3 + $0x30] sm:$0xff] }
  0x1a   :  { %524 = vmatpush1.bf16.msra.mxu0 %v1903_v51  ;;  %637 = vmatpush1.bf16.msra.mxu1 %v1905_v52  ;;  %v74_v51 = vld [vmem:[%s3234_s1 + $0x190] sm:$0xff]  ;;  %v2581_v37 = vld [vmem:[%s3239_s3 + $0x38] sm:$0xff] }
  0x1b   :  { %525 = vmatprep.subr.bf16.mxu0 %v1912_v53  ;;  %638 = vmatprep.subr.bf16.mxu1 %v1914_v55  ;;  %v78_v52 = vld [vmem:[%s3234_s1 + $0x1b0] sm:$0xff]  ;;  %v75_v53 = vld [vmem:[%s3234_s1 + $0x198] sm:$0xff]  ;;  %v1907_v55 = vcombine.low %v66_v43, %v70_v44  ;;  %v2595_v44 = vld [vmem:[%s3239_s3 + $0x48] sm:$0xff] }
  0x1c   :  { %v1916_v57 = vcombine.high %v74_v51, %v78_v52  ;;  %v1915_v0 = vcombine.low %v74_v51, %v78_v52  ;;  %v1917_v1 = vcombine.low %v75_v53, %v79_v54  ;;  %v2600_v45 = vld [vmem:[%s3239_s3 + $0x50] sm:$0xff]  ;;  %v2605_v46 = vld [vmem:[%s3239_s3 + $0x58] sm:$0xff]  ;;  %v2617_v51 = vld [vmem:[%s3239_s3 + $0x68] sm:$0xff] }
  0x1d   :  { %v2622_v52 = vld [vmem:[%s3239_s3 + $0x70] sm:$0xff] }
  0x1e   :  { %526 = vmatpush1.bf16.msra.mxu0 %v1911_v59  ;;  %639 = vmatpush1.bf16.msra.mxu1 %v1913_v60  ;;  %v1918_v59 = vcombine.high %v75_v53, %v79_v54  ;;  %v82_v60 = vld [vmem:[%s3234_s1 + $0x1d0] sm:$0xff] }
  0x1f   :  { %527 = vmatprep.subr.bf16.mxu0 %v1920_v61  ;;  %640 = vmatprep.subr.bf16.mxu1 %v1922_v62  ;;  %v86_v61 = vld [vmem:[%s3234_s1 + $0x1f0] sm:$0xff]  ;;  %v83_v62 = vld [vmem:[%s3234_s1 + $0x1d8] sm:$0xff] }
  0x20   :  { %v1924_v2 = vcombine.high %v82_v60, %v86_v61 }
  0x22   :  { %528 = vmatpush1.bf16.msra.mxu0 %v1919_v4  ;;  %641 = vmatpush1.bf16.msra.mxu1 %v1921_v5  ;;  %v1926_v4 = vcombine.high %v83_v62, %v87_v63  ;;  %v1923_v5 = vcombine.low %v82_v60, %v86_v61  ;;  %v2647_v60 = vld [vmem:[%s3239_s3 + $0x98] sm:$0xff]  ;;  %v2652_v61 = vld [vmem:[%s3239_s3 + $0xa0] sm:$0xff] }
  0x23   :  { %739 = vmatprep.subr.bf16.mxu0 %v1868_v6  ;;  %852 = vmatprep.subr.bf16.mxu1 %v1870_v7  ;;  %v1925_v6 = vcombine.low %v83_v62, %v87_v63  ;;  %v2099_v7 = vld [vmem:[%s3237_s0 + $0x20] sm:$0xff]   ;;  %v2657_v63 = vld [vmem:[%s3239_s3 + $0xa8] sm:$0xff] }
  0x25   :  { %546 = vmatmul.mubr.bf16.vlgmr.msra.gmra.mrb[0].mxu0 %v2365_v8  ;;  %659 = vmatmul.mubr.bf16.vlgmr.msra.gmra.mrb[0].mxu1 %v2365_v8 }
  0x26   :  { %740 = vmatpush1.bf16.msra.mxu0 %v1867_v11  ;;  %853 = vmatpush1.bf16.msra.mxu1 %v1869_v14  ;;  %v2102_v11 = vld [vmem:[%s3237_s0 + $0x38] sm:$0xff]   ;;  %v2524_v14 = vld [vmem:[%s3238_s2] sm:$0xff] }
  0x27   :  { %555 = vmatprep.mubr.bf16.mxu0 %v2215_v3  ;;  %668 = vmatprep.mubr.bf16.mxu1 %v2215_v3 }
  0x28   :  { %741 = vmatprep.subr.bf16.mxu0 %v1876_v15  ;;  %854 = vmatprep.subr.bf16.mxu1 %v1878_v18 }
  0x2a   :  { %742 = vmatpush1.bf16.msra.mxu0 %v1875_v21  ;;  %855 = vmatpush1.bf16.msra.mxu1 %v1877_v22 }
  0x2b   :  { %743 = vmatprep.subr.bf16.mxu0 %v1884_v23  ;;  %856 = vmatprep.subr.bf16.mxu1 %v1886_v24  ;;  %v2544_v24 = vld [vmem:[%s3239_s3] sm:$0xff] }
  0x2c   :  { %3299 = vst [vmem:[#allocation4_spill] sm:$0xff] %v2544_v24 }
  0x2d   :  { %556 = vmatmul.mubr.bf16.gmra.mrb[4].mxu0 %v2398_v25  ;;  %669 = vmatmul.mubr.bf16.gmra.mrb[4].mxu1 %v2398_v25 }
  0x2e   :  { %565 = vmatprep.mubr.bf16.mxu0 %v2215_v3  ;;  %678 = vmatprep.mubr.bf16.mxu1 %v2215_v3 }
  0x2f   :  { %744 = vmatpush1.bf16.msra.mxu0 %v1883_v30  ;;  %857 = vmatpush1.bf16.msra.mxu1 %v1885_v31  ;;  %v2564_v30 = vld [vmem:[%s3239_s3 + $0x20] sm:$0xff]  ;;  %v2569_v31 = vld [vmem:[%s3239_s3 + $0x28] sm:$0xff] }
  0x30   :  { %745 = vmatprep.subr.bf16.mxu0 %v1892_v32  ;;  %858 = vmatprep.subr.bf16.mxu1 %v1894_v33 }
  0x33   :  { %746 = vmatpush1.bf16.msra.mxu0 %v1891_v38  ;;  %859 = vmatpush1.bf16.msra.mxu1 %v1893_v39  ;;  %v2586_v38 = vld [vmem:[%s3239_s3 + $0x40] sm:$0xff] }
  0x34   :  { %747 = vmatprep.subr.bf16.mxu0 %v1900_v40  ;;  %860 = vmatprep.subr.bf16.mxu1 %v1902_v42 }
  0x35   :  { %566 = vmatmul.mubr.bf16.gmra.mrb[8].mxu0 %v2431_v41  ;;  %679 = vmatmul.mubr.bf16.gmra.mrb[8].mxu1 %v2431_v41 }
  0x36   :  { %575 = vmatprep.mubr.bf16.mxu0 %v2215_v3  ;;  %688 = vmatprep.mubr.bf16.mxu1 %v2215_v3 }
  0x37   :  { %748 = vmatpush1.bf16.msra.mxu0 %v1899_v47  ;;  %861 = vmatpush1.bf16.msra.mxu1 %v1901_v48 }
  0x38   :  { %749 = vmatprep.subr.bf16.mxu0 %v1908_v49  ;;  %862 = vmatprep.subr.bf16.mxu1 %v1910_v50  ;;  %v2612_v50 = vld [vmem:[%s3239_s3 + $0x60] sm:$0xff] }
  0x3b   :  { %750 = vmatpush1.bf16.msra.mxu0 %v1907_v55  ;;  %863 = vmatpush1.bf16.msra.mxu1 %v1909_v56  ;;  %v2627_v55 = vld [vmem:[%s3239_s3 + $0x78] sm:$0xff]  ;;  %v2632_v56 = vld [vmem:[%s3239_s3 + $0x80] sm:$0xff] }
  0x3c   :  { %751 = vmatprep.subr.bf16.mxu0 %v1916_v57  ;;  %864 = vmatprep.subr.bf16.mxu1 %v1918_v59  ;;  %v2637_v57 = vld [vmem:[%s3239_s3 + $0x88] sm:$0xff]  ;;  %v2642_v59 = vld [vmem:[%s3239_s3 + $0x90] sm:$0xff] }
  0x3d   :  { %576 = vmatmul.mubr.bf16.gmra.mrb[12].mxu0 %v2098_v58  ;;  %689 = vmatmul.mubr.bf16.gmra.mrb[12].mxu1 %v2098_v58 }
  0x3e   :  { %585 = vmatprep.mubr.bf16.mxu0 %v2215_v3  ;;  %698 = vmatprep.mubr.bf16.mxu1 %v2215_v3 }
  0x3f   :  { %752 = vmatpush1.bf16.msra.mxu0 %v1915_v0  ;;  %865 = vmatpush1.bf16.msra.mxu1 %v1917_v1  ;;  %v2662_v0 = vld [vmem:[%s3239_s3 + $0xb0] sm:$0xff]  ;;  %v2667_v1 = vld [vmem:[%s3239_s3 + $0xb8] sm:$0xff] }
  0x40   :  { %753 = vmatprep.subr.bf16.mxu0 %v1924_v2  ;;  %866 = vmatprep.subr.bf16.mxu1 %v1926_v4  ;;  %3302 = vst [vmem:[#allocation7_spill] sm:$0xff] %v2662_v0  ;;  %3303 = vst [vmem:[#allocation8_spill] sm:$0xff] %v2667_v1 }
  0x43   :  { %754 = vmatpush1.bf16.msra.mxu0 %v1923_v5  ;;  %867 = vmatpush1.bf16.msra.mxu1 %v1925_v6  ;;  %v2672_v5 = vld [vmem:[%s3239_s3 + $0xc0] sm:$0xff]  ;;  %v2677_v6 = vld [vmem:[%s3239_s3 + $0xc8] sm:$0xff] }
  0x44   :  { %3304 = vst [vmem:[#allocation9_spill] sm:$0xff] %v2672_v5  ;;  %3305 = vst [vmem:[#allocation10_spill] sm:$0xff] %v2677_v6 }
  0x45   :  { %586 = vmatmul.mubr.bf16.gmra.mrb[16].mxu0 %v2099_v7  ;;  %699 = vmatmul.mubr.bf16.gmra.mrb[16].mxu1 %v2099_v7 }
  0x46   :  { %595 = vmatprep.mubr.bf16.mxu0 %v2215_v3  ;;  %708 = vmatprep.mubr.bf16.mxu1 %v2215_v3 }
  0x4d   :  { %596 = vmatmul.mubr.bf16.gmra.mrb[20].mxu0 %v2100_v9  ;;  %709 = vmatmul.mubr.bf16.gmra.mrb[20].mxu1 %v2100_v9 }
  0x4e   :  { %605 = vmatprep.mubr.bf16.mxu0 %v2215_v3  ;;  %718 = vmatprep.mubr.bf16.mxu1 %v2215_v3 }
  0x55   :  { %606 = vmatmul.mubr.bf16.gmra.mrb[24].mxu0 %v2101_v10  ;;  %719 = vmatmul.mubr.bf16.gmra.mrb[24].mxu1 %v2101_v10 }
  0x56   :  { %615 = vmatprep.mubr.bf16.mxu0 %v2215_v3  ;;  %728 = vmatprep.mubr.bf16.mxu1 %v2215_v3 }
  0x5d   :  { %616 = vmatmul.mubr.bf16.gmra.mrb[28].mxu0 %v2102_v11  ;;  %729 = vmatmul.mubr.bf16.gmra.mrb[28].mxu1 %v2102_v11 }
  0x5e   :  { %771 = vmatprep.mubr.bf16.mxu0 %v2215_v3  ;;  %884 = vmatprep.mubr.bf16.mxu1 %v2215_v3 }
  0x65   :  { %772 = vmatmul.mubr.bf16.vlgmr.msra.gmra.mrb[32].mxu0 %v2365_v8  ;;  %885 = vmatmul.mubr.bf16.vlgmr.msra.gmra.mrb[32].mxu1 %v2365_v8  ;;  %v105_v8 = vlaneseq }
  0x66   :  { %781 = vmatprep.mubr.bf16.mxu0 %v2215_v3  ;;  %894 = vmatprep.mubr.bf16.mxu1 %v2215_v3 }
  0x67   :  { %v2518_v12 = vshrl.u32 %v105_v8, 7  ;;  %v2692_v8 = vld [vmem:[%s3239_s3 + $0xe0] sm:$0xff] }
  0x68   :  { %3308 = vst [vmem:[#allocation13_spill] sm:$0xff] %v2692_v8 }
  0x69   :  { %v107_v13 = vsub.s32 0, %v2518_v12  ;;  %v115_v15 = vsub.s32 2, %v2518_v12  ;;  %v111_v16 = vsub.s32 1, %v2518_v12  ;;  %v119_v17 = vsub.s32 3, %v2518_v12 }
  0x6b   :  { %v2533_v19 = vrot.slane %v2524_v14, %v115_v15  ;;  %v2536_v20 = vrot.slane %v2524_v14, %v111_v16  ;;  %v2539_v23 = vrot.slane %v2524_v14, %v119_v17 }
  0x6d   :  { %782 = vmatmul.mubr.bf16.gmra.mrb[36].mxu0 %v2398_v25  ;;  %895 = vmatmul.mubr.bf16.gmra.mrb[36].mxu1 %v2398_v25  ;;  %v2549_v25 = vld [vmem:[%s3239_s3 + $0x8] sm:$0xff] }
  0x6e   :  { %791 = vmatprep.mubr.bf16.mxu0 %v2215_v3  ;;  %904 = vmatprep.mubr.bf16.mxu1 %v2215_v3  ;;  %3300 = vst [vmem:[#allocation5_spill] sm:$0xff] %v2549_v25 }
  0x75   :  { %792 = vmatmul.mubr.bf16.gmra.mrb[40].mxu0 %v2431_v41  ;;  %905 = vmatmul.mubr.bf16.gmra.mrb[40].mxu1 %v2431_v41 }
  0x76   :  { %801 = vmatprep.mubr.bf16.mxu0 %v2215_v3  ;;  %914 = vmatprep.mubr.bf16.mxu1 %v2215_v3 }
  0x7d   :  { %802 = vmatmul.mubr.bf16.gmra.mrb[44].mxu0 %v2098_v58  ;;  %915 = vmatmul.mubr.bf16.gmra.mrb[44].mxu1 %v2098_v58 }
  0x7e   :  { %811 = vmatprep.mubr.bf16.mxu0 %v2215_v3  ;;  %924 = vmatprep.mubr.bf16.mxu1 %v2215_v3 }
  0x85   :  { %812 = vmatmul.mubr.bf16.gmra.mrb[48].mxu0 %v2099_v7  ;;  %925 = vmatmul.mubr.bf16.gmra.mrb[48].mxu1 %v2099_v7  ;;  %v2682_v7 = vld [vmem:[%s3239_s3 + $0xd0] sm:$0xff] }
  0x86   :  { %821 = vmatprep.mubr.bf16.mxu0 %v2215_v3  ;;  %934 = vmatprep.mubr.bf16.mxu1 %v2215_v3  ;;  %3306 = vst [vmem:[#allocation11_spill] sm:$0xff] %v2682_v7 }
  0x8d   :  { %822 = vmatmul.mubr.bf16.gmra.mrb[52].mxu0 %v2100_v9  ;;  %935 = vmatmul.mubr.bf16.gmra.mrb[52].mxu1 %v2100_v9 }
  0x8e   :  { %831 = vmatprep.mubr.bf16.mxu0 %v2215_v3  ;;  %944 = vmatprep.mubr.bf16.mxu1 %v2215_v3 }
  0x95   :  { %832 = vmatmul.mubr.bf16.gmra.mrb[56].mxu0 %v2101_v10  ;;  %945 = vmatmul.mubr.bf16.gmra.mrb[56].mxu1 %v2101_v10 }
  0x96   :  { %841 = vmatprep.mubr.bf16.mxu0 %v2215_v3  ;;  %954 = vmatprep.mubr.bf16.mxu1 %v2215_v3  ;;  %v2530_v3 = vrot.slane %v2524_v14, %v107_v13  ;;  %v2697_v13 = vld [vmem:[%s3239_s3 + $0xe8] sm:$0xff] }
  0x97   :  { %3309 = vst [vmem:[#allocation14_spill] sm:$0xff] %v2697_v13 }
  0x9d   :  { %842 = vmatmul.mubr.bf16.gmra.mrb[60].mxu0 %v2102_v11  ;;  %955 = vmatmul.mubr.bf16.gmra.mrb[60].mxu1 %v2102_v11  ;;  %v2687_v11 = vld [vmem:[%s3239_s3 + $0xd8] sm:$0xff] }
  0x9e   :  { %3307 = vst [vmem:[#allocation12_spill] sm:$0xff] %v2687_v11 }
  0xf8   :  { %v547_v18 = vpop.f32.mrb[0].mxu0  ;;  %v660_v21 = vpop.f32.mrb[0].mxu1 }
  0xf9   :  { %v549_v22 = vpop.f32.mrb[1].mxu0  ;;  %v662_v27 = vpop.f32.mrb[1].mxu1  ;;  %v548_v32 = vadd.f32 %v547_v18, %v2530_v3  ;;  %v661_v39 = vadd.f32 %v660_v21, %v2533_v19  ;;  %v2704_v21 = vld [vmem:[%s3239_s3 + $0xf0] sm:$0xff] }
  0xfa   :  { %v551_v28 = vpop.f32.mrb[2].mxu0  ;;  %v664_v34 = vpop.f32.mrb[2].mxu1  ;;  %v550_v40 = vadd.f32 %v549_v22, %v2536_v20  ;;  %v663_v47 = vadd.f32 %v662_v27, %v2539_v23  ;;  %3310 = vst [vmem:[#allocation15_spill] sm:$0xff] %v2704_v21  ;;  %v2709_v22 = vld [vmem:[%s3239_s3 + $0xf8] sm:$0xff]  ;;  %v2714_v27 = vld [vmem:[%s3240_s4] sm:$0xff] }
  0xfb   :  { %v552_v33 = vadd.f32 %v551_v28, %v2530_v3  ;;  %v553_v35 = vpop.f32.mrb[3].mxu0  ;;  %v665_v41 = vadd.f32 %v664_v34, %v2533_v19  ;;  %v666_v43 = vpop.f32.mrb[3].mxu1  ;;  %3311 = vst [vmem:[#allocation16_spill] sm:$0xff] %v2709_v22 }
  0xfc   :  { %v554_v42 = vadd.f32 %v553_v35, %v2536_v20  ;;  %v667_v49 = vadd.f32 %v666_v43, %v2539_v23 }
  0xfd   :  { %v965_v48 = vpack.c.bf16 %v552_v33, %v548_v32  ;;  %v967_v53 = vpack.c.bf16 %v665_v41, %v661_v39  ;;  %v2723_v39 = vld [vmem:[%s3240_s4 + $0x8] sm:$0xff]  ;;  %v2733_v41 = vld [vmem:[%s3240_s4 + $0x18] sm:$0xff] }
  0xfe   :  { %v966_v54 = vpack.c.bf16 %v554_v42, %v550_v40  ;;  %v968_v58 = vpack.c.bf16 %v667_v49, %v663_v47  ;;  %v2728_v40 = vld [vmem:[%s3240_s4 + $0x10] sm:$0xff]  ;;  %v2745_v49 = vld [vmem:[%s3240_s4 + $0x28] sm:$0xff] }
  0xff   :  { %997 = vst [vmem:[#allocation2] sm:$0xff] %v965_v48  ;;  %999 = vst [vmem:[#allocation2 + $0x10] sm:$0xff] %v967_v53  ;;  %v2740_v48 = vld [vmem:[%s3240_s4 + $0x20] sm:$0xff]  ;;  %v2750_v53 = vld [vmem:[%s3240_s4 + $0x30] sm:$0xff] }
 0x100   :  { %998 = vst [vmem:[#allocation2 + $0x8] sm:$0xff] %v966_v54  ;;  %v557_v62 = vpop.f32.mrb[4].mxu0  ;;  %1000 = vst [vmem:[#allocation2 + $0x18] sm:$0xff] %v968_v58  ;;  %v670_v2 = vpop.f32.mrb[4].mxu1 }
 0x101   :  { %v559_v4 = vpop.f32.mrb[5].mxu0  ;;  %v672_v9 = vpop.f32.mrb[5].mxu1  ;;  %v558_v15 = vadd.f32 %v557_v62, %v2530_v3  ;;  %v671_v28 = vadd.f32 %v670_v2, %v2533_v19  ;;  %3312 = vst [vmem:[#allocation17_spill] sm:$0xff] %v2740_v48  ;;  %3313 = vst [vmem:[#allocation18_spill] sm:$0xff] %v2745_v49  ;;  %v2755_v62 = vld [vmem:[%s3240_s4 + $0x38] sm:$0xff]  ;;  %v2760_v2 = vld [vmem:[%s3240_s4 + $0x40] sm:$0xff] }
 0x102   :  { %v561_v10 = vpop.f32.mrb[6].mxu0  ;;  %v674_v17 = vpop.f32.mrb[6].mxu1  ;;  %v560_v32 = vadd.f32 %v559_v4, %v2536_v20  ;;  %v673_v42 = vadd.f32 %v672_v9, %v2539_v23  ;;  %3314 = vst [vmem:[#allocation19_spill] sm:$0xff] %v2755_v62  ;;  %3315 = vst [vmem:[#allocation20_spill] sm:$0xff] %v2760_v2  ;;  %v2765_v4 = vld [vmem:[%s3240_s4 + $0x48] sm:$0xff] }
 0x103   :  { %v562_v16 = vadd.f32 %v561_v10, %v2530_v3  ;;  %v563_v18 = vpop.f32.mrb[7].mxu0  ;;  %v675_v33 = vadd.f32 %v674_v17, %v2533_v19  ;;  %v676_v35 = vpop.f32.mrb[7].mxu1  ;;  %3316 = vst [vmem:[#allocation21_spill] sm:$0xff] %v2765_v4  ;;  %v2770_v10 = vld [vmem:[%s3240_s4 + $0x50] sm:$0xff] }
 0x104   :  { %v564_v34 = vadd.f32 %v563_v18, %v2536_v20  ;;  %v677_v47 = vadd.f32 %v676_v35, %v2539_v23  ;;  %3317 = vst [vmem:[#allocation22_spill] sm:$0xff] %v2770_v10  ;;  %v2785_v18 = vld [vmem:[%s3240_s4 + $0x68] sm:$0xff]  ;;  %v2800_v35 = vld [vmem:[%s3240_s4 + $0x80] sm:$0xff] }
 0x105   :  { %v969_v43 = vpack.c.bf16 %v562_v16, %v558_v15  ;;  %v971_v54 = vpack.c.bf16 %v675_v33, %v671_v28  ;;  %v2775_v15 = vld [vmem:[%s3240_s4 + $0x58] sm:$0xff]  ;;  %v2780_v16 = vld [vmem:[%s3240_s4 + $0x60] sm:$0xff]  ;;  %3320 = vst [vmem:[#allocation25_spill] sm:$0xff] %v2785_v18  ;;  %v2790_v28 = vld [vmem:[%s3240_s4 + $0x70] sm:$0xff] }
 0x106   :  { %v970_v58 = vpack.c.bf16 %v564_v34, %v560_v32  ;;  %v972_v9 = vpack.c.bf16 %v677_v47, %v673_v42  ;;  %3318 = vst [vmem:[#allocation23_spill] sm:$0xff] %v2775_v15  ;;  %3319 = vst [vmem:[#allocation24_spill] sm:$0xff] %v2780_v16  ;;  %v2795_v32 = vld [vmem:[%s3240_s4 + $0x78] sm:$0xff]  ;;  %v2805_v42 = vld [vmem:[%s3240_s4 + $0x88] sm:$0xff] }
 0x107   :  { %1001 = vst [vmem:[#allocation2 + $0x20] sm:$0xff] %v969_v43  ;;  %1003 = vst [vmem:[#allocation2 + $0x30] sm:$0xff] %v971_v54  ;;  %v2810_v43 = vld [vmem:[%s3240_s4 + $0x90] sm:$0xff] }
 0x108   :  { %1002 = vst [vmem:[#allocation2 + $0x28] sm:$0xff] %v970_v58  ;;  %v567_v17 = vpop.f32.mrb[8].mxu0  ;;  %3321 = vst [vmem:[#allocation26_spill] sm:$0xff] %v2790_v28  ;;  %v680_v33 = vpop.f32.mrb[8].mxu1  ;;  %v2815_v58 = vld [vmem:[%s3240_s4 + $0x98] sm:$0xff] }
 0x109   :  { %3322 = vst [vmem:[#allocation27_spill] sm:$0xff] %v2795_v32  ;;  %1004 = vst [vmem:[#allocation2 + $0x38] sm:$0xff] %v972_v9  ;;  %v569_v34 = vpop.f32.mrb[9].mxu0  ;;  %v682_v47 = vpop.f32.mrb[9].mxu1  ;;  %v2820_v9 = vld [vmem:[%s3240_s4 + $0xa0] sm:$0xff] }
 0x10a   :  { %3323 = vst [vmem:[#allocation28_spill] sm:$0xff] %v2800_v35  ;;  %3324 = vst [vmem:[#allocation29_spill] sm:$0xff] %v2805_v42  ;;  %v571_v54 = vpop.f32.mrb[10].mxu0  ;;  %v2825_v42 = vld [vmem:[%s3240_s4 + $0xa8] sm:$0xff]  ;;  %v568_v35 = vadd.f32 %v567_v17, %v2530_v3  ;;  %v684_v18 = vpop.f32.mrb[10].mxu1  ;;  %v681_v17 = vadd.f32 %v680_v33, %v2533_v19  ;;  %v2861_v33 = vld [vmem:[%s3240_s4 + $0xd8] sm:$0xff] }
 0x10b   :  { %3325 = vst [vmem:[#allocation30_spill] sm:$0xff] %v2810_v43  ;;  %3326 = vst [vmem:[#allocation31_spill] sm:$0xff] %v2815_v58  ;;  %v572_v43 = vadd.f32 %v571_v54, %v2530_v3  ;;  %v573_v32 = vpop.f32.mrb[11].mxu0  ;;  %v2832_v58 = vld [vmem:[%s3240_s4 + $0xb0] sm:$0xff]  ;;  %v570_v54 = vadd.f32 %v569_v34, %v2536_v20  ;;  %v685_v16 = vadd.f32 %v684_v18, %v2533_v19  ;;  %v686_v4 = vpop.f32.mrb[11].mxu1 }
 0x10c   :  { %3327 = vst [vmem:[#allocation32_spill] sm:$0xff] %v2820_v9  ;;  %3328 = vst [vmem:[#allocation33_spill] sm:$0xff] %v2825_v42  ;;  %v2837_v9 = vld [vmem:[%s3240_s4 + $0xb8] sm:$0xff]  ;;  %v2842_v42 = vld [vmem:[%s3240_s4 + $0xc0] sm:$0xff]  ;;  %v574_v28 = vadd.f32 %v573_v32, %v2536_v20  ;;  %v683_v18 = vadd.f32 %v682_v47, %v2539_v23  ;;  %v687_v32 = vadd.f32 %v686_v4, %v2539_v23 }
 0x10d   :  { %3329 = vst [vmem:[#allocation34_spill] sm:$0xff] %v2832_v58  ;;  %3330 = vst [vmem:[#allocation35_spill] sm:$0xff] %v2837_v9  ;;  %v2851_v58 = vld [vmem:[%s3240_s4 + $0xc8] sm:$0xff]  ;;  %v2856_v9 = vld [vmem:[%s3240_s4 + $0xd0] sm:$0xff]  ;;  %v973_v34 = vpack.c.bf16 %v572_v43, %v568_v35 }
 0x10e   :  { %3331 = vst [vmem:[#allocation36_spill] sm:$0xff] %v2842_v42  ;;  %3332 = vst [vmem:[#allocation37_spill] sm:$0xff] %v2851_v58  ;;  %v2868_v42 = vld [vmem:[%s3240_s4 + $0xe0] sm:$0xff]  ;;  %v2873_v58 = vld [vmem:[%s3240_s4 + $0xe8] sm:$0xff]  ;;  %v974_v47 = vpack.c.bf16 %v574_v28, %v570_v54  ;;  %v976_v35 = vpack.c.bf16 %v687_v32, %v683_v18 }
 0x10f   :  { %3333 = vst [vmem:[#allocation38_spill] sm:$0xff] %v2856_v9  ;;  %3334 = vst [vmem:[#allocation39_spill] sm:$0xff] %v2861_v33  ;;  %v2878_v9 = vld [vmem:[%s3240_s4 + $0xf0] sm:$0xff]  ;;  %v975_v33 = vpack.c.bf16 %v685_v16, %v681_v17  ;;  %v2883_v4 = vld [vmem:[%s3240_s4 + $0xf8] sm:$0xff]  ;;  %s3021_s4 = smov 0  }
 0x110   :  { %3335 = vst [vmem:[#allocation40_spill] sm:$0xff] %v2868_v42  ;;  %3336 = vst [vmem:[#allocation41_spill] sm:$0xff] %v2873_v58  ;;  %v577_v43 = vpop.f32.mrb[12].mxu0  ;;  %v690_v42 = vpop.f32.mrb[12].mxu1 }
 0x111   :  { %3337 = vst [vmem:[#allocation42_spill] sm:$0xff] %v2878_v9  ;;  %3338 = vst [vmem:[#allocation43_spill] sm:$0xff] %v2883_v4  ;;  %v579_v58 = vpop.f32.mrb[13].mxu0  ;;  %v692_v15 = vpop.f32.mrb[13].mxu1  ;;  %v578_v10 = vadd.f32 %v577_v43, %v2530_v3  ;;  %v691_v54 = vadd.f32 %v690_v42, %v2533_v19 }
 0x112   :  { %1005 = vst [vmem:[#allocation2 + $0x40] sm:$0xff] %v973_v34  ;;  %1007 = vst [vmem:[#allocation2 + $0x50] sm:$0xff] %v975_v33  ;;  %v581_v2 = vpop.f32.mrb[14].mxu0  ;;  %v694_v28 = vpop.f32.mrb[14].mxu1  ;;  %v580_v4 = vadd.f32 %v579_v58, %v2536_v20  ;;  %v693_v32 = vadd.f32 %v692_v15, %v2539_v23 }
 0x113   :  { %1006 = vst [vmem:[#allocation2 + $0x48] sm:$0xff] %v974_v47  ;;  %1008 = vst [vmem:[#allocation2 + $0x58] sm:$0xff] %v976_v35  ;;  %v582_v16 = vadd.f32 %v581_v2, %v2530_v3  ;;  %v583_v17 = vpop.f32.mrb[15].mxu0  ;;  %v695_v18 = vadd.f32 %v694_v28, %v2533_v19  ;;  %v696_v34 = vpop.f32.mrb[15].mxu1 }
 0x114   :  { %v584_v33 = vadd.f32 %v583_v17, %v2536_v20  ;;  %v697_v35 = vadd.f32 %v696_v34, %v2539_v23 }
 0x115   :  { %v977_v47 = vpack.c.bf16 %v582_v16, %v578_v10  ;;  %v979_v9 = vpack.c.bf16 %v695_v18, %v691_v54 }
 0x116   :  { %v978_v43 = vpack.c.bf16 %v584_v33, %v580_v4  ;;  %v980_v2 = vpack.c.bf16 %v697_v35, %v693_v32 }
 0x117   :  { %1009 = vst [vmem:[#allocation2 + $0x60] sm:$0xff] %v977_v47  ;;  %1011 = vst [vmem:[#allocation2 + $0x70] sm:$0xff] %v979_v9 }
 0x118   :  { %1010 = vst [vmem:[#allocation2 + $0x68] sm:$0xff] %v978_v43  ;;  %v587_v49 = vpop.f32.mrb[16].mxu0  ;;  %1012 = vst [vmem:[#allocation2 + $0x78] sm:$0xff] %v980_v2  ;;  %v700_v42 = vpop.f32.mrb[16].mxu1 }
 0x119   :  { %v589_v58 = vpop.f32.mrb[17].mxu0  ;;  %v702_v62 = vpop.f32.mrb[17].mxu1  ;;  %v588_v17 = vadd.f32 %v587_v49, %v2530_v3  ;;  %v701_v16 = vadd.f32 %v700_v42, %v2533_v19 }
 0x11a   :  { %v591_v28 = vpop.f32.mrb[18].mxu0  ;;  %v704_v15 = vpop.f32.mrb[18].mxu1  ;;  %v590_v4 = vadd.f32 %v589_v58, %v2536_v20  ;;  %v703_v33 = vadd.f32 %v702_v62, %v2539_v23 }
 0x11b   :  { %v592_v48 = vadd.f32 %v591_v28, %v2530_v3  ;;  %v593_v10 = vpop.f32.mrb[19].mxu0  ;;  %v705_v54 = vadd.f32 %v704_v15, %v2533_v19  ;;  %v706_v18 = vpop.f32.mrb[19].mxu1 }
 0x11c   :  { %v594_v9 = vadd.f32 %v593_v10, %v2536_v20  ;;  %v707_v32 = vadd.f32 %v706_v18, %v2539_v23 }
 0x11d   :  { %v981_v34 = vpack.c.bf16 %v592_v48, %v588_v17  ;;  %v983_v47 = vpack.c.bf16 %v705_v54, %v701_v16 }
 0x11e   :  { %v982_v49 = vpack.c.bf16 %v594_v9, %v590_v4  ;;  %v984_v35 = vpack.c.bf16 %v707_v32, %v703_v33 }
 0x11f   :  { %1013 = vst [vmem:[#allocation2 + $0x80] sm:$0xff] %v981_v34  ;;  %1015 = vst [vmem:[#allocation2 + $0x90] sm:$0xff] %v983_v47 }
 0x120   :  { %1014 = vst [vmem:[#allocation2 + $0x88] sm:$0xff] %v982_v49  ;;  %v597_v43 = vpop.f32.mrb[20].mxu0  ;;  %1016 = vst [vmem:[#allocation2 + $0x98] sm:$0xff] %v984_v35  ;;  %v710_v2 = vpop.f32.mrb[20].mxu1 }
 0x121   :  { %v599_v42 = vpop.f32.mrb[21].mxu0  ;;  %v712_v58 = vpop.f32.mrb[21].mxu1  ;;  %v598_v15 = vadd.f32 %v597_v43, %v2530_v3  ;;  %v711_v17 = vadd.f32 %v710_v2, %v2533_v19 }
 0x122   :  { %v601_v28 = vpop.f32.mrb[22].mxu0  ;;  %v714_v62 = vpop.f32.mrb[22].mxu1  ;;  %v600_v16 = vadd.f32 %v599_v42, %v2536_v20  ;;  %v713_v18 = vadd.f32 %v712_v58, %v2539_v23 }
 0x123   :  { %v602_v10 = vadd.f32 %v601_v28, %v2530_v3  ;;  %v603_v48 = vpop.f32.mrb[23].mxu0  ;;  %v715_v4 = vadd.f32 %v714_v62, %v2533_v19  ;;  %v716_v9 = vpop.f32.mrb[23].mxu1 }
 0x124   :  { %v604_v54 = vadd.f32 %v603_v48, %v2536_v20  ;;  %v717_v34 = vadd.f32 %v716_v9, %v2539_v23 }
 0x125   :  { %v985_v33 = vpack.c.bf16 %v602_v10, %v598_v15  ;;  %v987_v32 = vpack.c.bf16 %v715_v4, %v711_v17 }
 0x126   :  { %v986_v47 = vpack.c.bf16 %v604_v54, %v600_v16  ;;  %v988_v49 = vpack.c.bf16 %v717_v34, %v713_v18 }
 0x127   :  { %1017 = vst [vmem:[#allocation2 + $0xa0] sm:$0xff] %v985_v33  ;;  %1019 = vst [vmem:[#allocation2 + $0xb0] sm:$0xff] %v987_v32 }
 0x128   :  { %1018 = vst [vmem:[#allocation2 + $0xa8] sm:$0xff] %v986_v47  ;;  %v607_v35 = vpop.f32.mrb[24].mxu0  ;;  %1020 = vst [vmem:[#allocation2 + $0xb8] sm:$0xff] %v988_v49  ;;  %v720_v43 = vpop.f32.mrb[24].mxu1 }
 0x129   :  { %v609_v2 = vpop.f32.mrb[25].mxu0  ;;  %v722_v42 = vpop.f32.mrb[25].mxu1  ;;  %v608_v62 = vadd.f32 %v607_v35, %v2530_v3  ;;  %v721_v10 = vadd.f32 %v720_v43, %v2533_v19 }
 0x12a   :  { %v611_v28 = vpop.f32.mrb[26].mxu0  ;;  %v724_v58 = vpop.f32.mrb[26].mxu1  ;;  %v610_v17 = vadd.f32 %v609_v2, %v2536_v20  ;;  %v723_v9 = vadd.f32 %v722_v42, %v2539_v23 }
 0x12b   :  { %v612_v48 = vadd.f32 %v611_v28, %v2530_v3  ;;  %v613_v15 = vpop.f32.mrb[27].mxu0  ;;  %v725_v16 = vadd.f32 %v724_v58, %v2533_v19  ;;  %v726_v54 = vpop.f32.mrb[27].mxu1  ;;  %v123_v58 = vsub.s32 4, %v2518_v12 }
 0x12c   :  { %v614_v4 = vadd.f32 %v613_v15, %v2536_v20  ;;  %v727_v33 = vadd.f32 %v726_v54, %v2539_v23 }
 0x12d   :  { %v989_v18 = vpack.c.bf16 %v612_v48, %v608_v62  ;;  %v991_v34 = vpack.c.bf16 %v725_v16, %v721_v10  ;;  %v131_v10 = vsub.s32 6, %v2518_v12 }
 0x12e   :  { %v990_v32 = vpack.c.bf16 %v614_v4, %v610_v17  ;;  %v992_v47 = vpack.c.bf16 %v727_v33, %v723_v9  ;;  %v127_v17 = vsub.s32 5, %v2518_v12 }
 0x12f   :  { %1021 = vst [vmem:[#allocation2 + $0xc0] sm:$0xff] %v989_v18  ;;  %1023 = vst [vmem:[#allocation2 + $0xd0] sm:$0xff] %v991_v34 }
 0x130   :  { %1022 = vst [vmem:[#allocation2 + $0xc8] sm:$0xff] %v990_v32  ;;  %v617_v49 = vpop.f32.mrb[28].mxu0  ;;  %1024 = vst [vmem:[#allocation2 + $0xd8] sm:$0xff] %v992_v47  ;;  %v730_v35 = vpop.f32.mrb[28].mxu1  ;;  %v135_v32 = vsub.s32 7, %v2518_v12 }
 0x131   :  { %v619_v43 = vpop.f32.mrb[29].mxu0  ;;  %v732_v2 = vpop.f32.mrb[29].mxu1  ;;  %v618_v15 = vadd.f32 %v617_v49, %v2530_v3  ;;  %v731_v16 = vadd.f32 %v730_v35, %v2533_v19  ;;  %v2930_v35 = vrot.slane %v2524_v14, %v123_v58 }
 0x132   :  { %v621_v28 = vpop.f32.mrb[30].mxu0  ;;  %v734_v62 = vpop.f32.mrb[30].mxu1  ;;  %v620_v4 = vadd.f32 %v619_v43, %v2536_v20  ;;  %v733_v33 = vadd.f32 %v732_v2, %v2539_v23  ;;  %v2936_v43 = vrot.slane %v2524_v14, %v127_v17  ;;  %v2939_v12 = vrot.slane %v2524_v14, %v135_v32 }
 0x133   :  { %v622_v42 = vadd.f32 %v621_v28, %v2530_v3  ;;  %v623_v48 = vpop.f32.mrb[31].mxu0  ;;  %v735_v54 = vadd.f32 %v734_v62, %v2533_v19  ;;  %v736_v18 = vpop.f32.mrb[31].mxu1 }
 0x134   :  { %v624_v9 = vadd.f32 %v623_v48, %v2536_v20  ;;  %v737_v3 = vadd.f32 %v736_v18, %v2539_v23  ;;  %v2933_v20 = vrot.slane %v2524_v14, %v131_v10 }
 0x135   :  { %v993_v34 = vpack.c.bf16 %v622_v42, %v618_v15  ;;  %v995_v47 = vpack.c.bf16 %v735_v54, %v731_v16 }
 0x136   :  { %v994_v49 = vpack.c.bf16 %v624_v9, %v620_v4  ;;  %v996_v28 = vpack.c.bf16 %v737_v3, %v733_v33 }
 0x137   :  { %1025 = vst [vmem:[#allocation2 + $0xe0] sm:$0xff] %v993_v34  ;;  %1027 = vst [vmem:[#allocation2 + $0xf0] sm:$0xff] %v995_v47 }
 0x138   :  { %1026 = vst [vmem:[#allocation2 + $0xe8] sm:$0xff] %v994_v49  ;;  %v773_v19 = vpop.f32.mrb[32].mxu0  ;;  %1028 = vst [vmem:[#allocation2 + $0xf8] sm:$0xff] %v996_v28  ;;  %v886_v23 = vpop.f32.mrb[32].mxu1 }
 0x139   :  { %v775_v2 = vpop.f32.mrb[33].mxu0  ;;  %v888_v15 = vpop.f32.mrb[33].mxu1  ;;  %v774_v58 = vadd.f32 %v773_v19, %v2930_v35  ;;  %v887_v10 = vadd.f32 %v886_v23, %v2933_v20 }
 0x13a   :  { %v777_v42 = vpop.f32.mrb[34].mxu0  ;;  %v890_v48 = vpop.f32.mrb[34].mxu1  ;;  %v776_v4 = vadd.f32 %v775_v2, %v2936_v43  ;;  %v889_v14 = vadd.f32 %v888_v15, %v2939_v12 }
 0x13b   :  { %v778_v62 = vadd.f32 %v777_v42, %v2930_v35  ;;  %v779_v16 = vpop.f32.mrb[35].mxu0  ;;  %v891_v17 = vadd.f32 %v890_v48, %v2933_v20  ;;  %v892_v9 = vpop.f32.mrb[35].mxu1 }
 0x13c   :  { %v780_v54 = vadd.f32 %v779_v16, %v2936_v43  ;;  %v893_v33 = vadd.f32 %v892_v9, %v2939_v12 }
 0x13d   :  { %v1029_v18 = vpack.c.bf16 %v778_v62, %v774_v58  ;;  %v1031_v34 = vpack.c.bf16 %v891_v17, %v887_v10 }
 0x13e   :  { %v1030_v3 = vpack.c.bf16 %v780_v54, %v776_v4  ;;  %v1032_v32 = vpack.c.bf16 %v893_v33, %v889_v14 }
 0x13f   :  { %1061 = vst [vmem:[#allocation3] sm:$0xff] %v1029_v18  ;;  %1063 = vst [vmem:[#allocation3 + $0x10] sm:$0xff] %v1031_v34 }
 0x140   :  { %1062 = vst [vmem:[#allocation3 + $0x8] sm:$0xff] %v1030_v3  ;;  %v783_v47 = vpop.f32.mrb[36].mxu0  ;;  %1064 = vst [vmem:[#allocation3 + $0x18] sm:$0xff] %v1032_v32  ;;  %v896_v49 = vpop.f32.mrb[36].mxu1 }
 0x141   :  { %v785_v28 = vpop.f32.mrb[37].mxu0  ;;  %v898_v19 = vpop.f32.mrb[37].mxu1  ;;  %v784_v2 = vadd.f32 %v783_v47, %v2930_v35  ;;  %v897_v62 = vadd.f32 %v896_v49, %v2933_v20 }
 0x142   :  { %v787_v23 = vpop.f32.mrb[38].mxu0  ;;  %v900_v15 = vpop.f32.mrb[38].mxu1  ;;  %v786_v48 = vadd.f32 %v785_v28, %v2936_v43  ;;  %v899_v17 = vadd.f32 %v898_v19, %v2939_v12 }
 0x143   :  { %v788_v42 = vadd.f32 %v787_v23, %v2930_v35  ;;  %v789_v58 = vpop.f32.mrb[39].mxu0  ;;  %v901_v16 = vadd.f32 %v900_v15, %v2933_v20  ;;  %v902_v4 = vpop.f32.mrb[39].mxu1 }
 0x144   :  { %v790_v10 = vadd.f32 %v789_v58, %v2936_v43  ;;  %v903_v9 = vadd.f32 %v902_v4, %v2939_v12 }
 0x145   :  { %v1033_v54 = vpack.c.bf16 %v788_v42, %v784_v2  ;;  %v1035_v14 = vpack.c.bf16 %v901_v16, %v897_v62 }
 0x146   :  { %v1034_v18 = vpack.c.bf16 %v790_v10, %v786_v48  ;;  %v1036_v33 = vpack.c.bf16 %v903_v9, %v899_v17 }
 0x147   :  { %1065 = vst [vmem:[#allocation3 + $0x20] sm:$0xff] %v1033_v54  ;;  %1067 = vst [vmem:[#allocation3 + $0x30] sm:$0xff] %v1035_v14 }
 0x148   :  { %1066 = vst [vmem:[#allocation3 + $0x28] sm:$0xff] %v1034_v18  ;;  %v793_v34 = vpop.f32.mrb[40].mxu0  ;;  %1068 = vst [vmem:[#allocation3 + $0x38] sm:$0xff] %v1036_v33  ;;  %v906_v3 = vpop.f32.mrb[40].mxu1 }
 0x149   :  { %v795_v32 = vpop.f32.mrb[41].mxu0  ;;  %v908_v47 = vpop.f32.mrb[41].mxu1  ;;  %v794_v28 = vadd.f32 %v793_v34, %v2930_v35  ;;  %v907_v42 = vadd.f32 %v906_v3, %v2933_v20 }
 0x14a   :  { %v797_v49 = vpop.f32.mrb[42].mxu0  ;;  %v910_v19 = vpop.f32.mrb[42].mxu1  ;;  %v796_v15 = vadd.f32 %v795_v32, %v2936_v43  ;;  %v909_v16 = vadd.f32 %v908_v47, %v2939_v12 }
 0x14b   :  { %v798_v23 = vadd.f32 %v797_v49, %v2930_v35  ;;  %v799_v2 = vpop.f32.mrb[43].mxu0  ;;  %v911_v58 = vadd.f32 %v910_v19, %v2933_v20  ;;  %v912_v48 = vpop.f32.mrb[43].mxu1 }
 0x14c   :  { %v800_v62 = vadd.f32 %v799_v2, %v2936_v43  ;;  %v913_v4 = vadd.f32 %v912_v48, %v2939_v12 }
 0x14d   :  { %v1037_v10 = vpack.c.bf16 %v798_v23, %v794_v28  ;;  %v1039_v17 = vpack.c.bf16 %v911_v58, %v907_v42 }
 0x14e   :  { %v1038_v54 = vpack.c.bf16 %v800_v62, %v796_v15  ;;  %v1040_v9 = vpack.c.bf16 %v913_v4, %v909_v16 }
 0x14f   :  { %1069 = vst [vmem:[#allocation3 + $0x40] sm:$0xff] %v1037_v10  ;;  %1071 = vst [vmem:[#allocation3 + $0x50] sm:$0xff] %v1039_v17 }
 0x150   :  { %1070 = vst [vmem:[#allocation3 + $0x48] sm:$0xff] %v1038_v54  ;;  %v803_v14 = vpop.f32.mrb[44].mxu0  ;;  %1072 = vst [vmem:[#allocation3 + $0x58] sm:$0xff] %v1040_v9  ;;  %v916_v18 = vpop.f32.mrb[44].mxu1 }
 0x151   :  { %v805_v33 = vpop.f32.mrb[45].mxu0  ;;  %v918_v34 = vpop.f32.mrb[45].mxu1  ;;  %v804_v32 = vadd.f32 %v803_v14, %v2930_v35  ;;  %v917_v23 = vadd.f32 %v916_v18, %v2933_v20 }
 0x152   :  { %v807_v3 = vpop.f32.mrb[46].mxu0  ;;  %v920_v47 = vpop.f32.mrb[46].mxu1  ;;  %v806_v19 = vadd.f32 %v805_v33, %v2936_v43  ;;  %v919_v58 = vadd.f32 %v918_v34, %v2939_v12 }
 0x153   :  { %v808_v49 = vadd.f32 %v807_v3, %v2930_v35  ;;  %v809_v28 = vpop.f32.mrb[47].mxu0  ;;  %v921_v2 = vadd.f32 %v920_v47, %v2933_v20  ;;  %v922_v15 = vpop.f32.mrb[47].mxu1 }
 0x154   :  { %v810_v42 = vadd.f32 %v809_v28, %v2936_v43  ;;  %v923_v48 = vadd.f32 %v922_v15, %v2939_v12 }
 0x155   :  { %v1041_v62 = vpack.c.bf16 %v808_v49, %v804_v32  ;;  %v1043_v16 = vpack.c.bf16 %v921_v2, %v917_v23 }
 0x156   :  { %v1042_v10 = vpack.c.bf16 %v810_v42, %v806_v19  ;;  %v1044_v4 = vpack.c.bf16 %v923_v48, %v919_v58 }
 0x157   :  { %1073 = vst [vmem:[#allocation3 + $0x60] sm:$0xff] %v1041_v62  ;;  %1075 = vst [vmem:[#allocation3 + $0x70] sm:$0xff] %v1043_v16 }
 0x158   :  { %1074 = vst [vmem:[#allocation3 + $0x68] sm:$0xff] %v1042_v10  ;;  %v813_v17 = vpop.f32.mrb[48].mxu0  ;;  %1076 = vst [vmem:[#allocation3 + $0x78] sm:$0xff] %v1044_v4  ;;  %v926_v54 = vpop.f32.mrb[48].mxu1 }
 0x159   :  { %v815_v9 = vpop.f32.mrb[49].mxu0  ;;  %v928_v14 = vpop.f32.mrb[49].mxu1  ;;  %v814_v33 = vadd.f32 %v813_v17, %v2930_v35  ;;  %v927_v49 = vadd.f32 %v926_v54, %v2933_v20 }
 0x15a   :  { %v817_v18 = vpop.f32.mrb[50].mxu0  ;;  %v930_v34 = vpop.f32.mrb[50].mxu1  ;;  %v816_v47 = vadd.f32 %v815_v9, %v2936_v43  ;;  %v929_v2 = vadd.f32 %v928_v14, %v2939_v12 }
 0x15b   :  { %v818_v3 = vadd.f32 %v817_v18, %v2930_v35  ;;  %v819_v32 = vpop.f32.mrb[51].mxu0  ;;  %v931_v28 = vadd.f32 %v930_v34, %v2933_v20  ;;  %v932_v19 = vpop.f32.mrb[51].mxu1 }
 0x15c   :  { %v820_v23 = vadd.f32 %v819_v32, %v2936_v43  ;;  %v933_v15 = vadd.f32 %v932_v19, %v2939_v12 }
 0x15d   :  { %v1045_v42 = vpack.c.bf16 %v818_v3, %v814_v33  ;;  %v1047_v58 = vpack.c.bf16 %v931_v28, %v927_v49 }
 0x15e   :  { %v1046_v62 = vpack.c.bf16 %v820_v23, %v816_v47  ;;  %v1048_v48 = vpack.c.bf16 %v933_v15, %v929_v2 }
 0x15f   :  { %1077 = vst [vmem:[#allocation3 + $0x80] sm:$0xff] %v1045_v42  ;;  %1079 = vst [vmem:[#allocation3 + $0x90] sm:$0xff] %v1047_v58 }
 0x160   :  { %1078 = vst [vmem:[#allocation3 + $0x88] sm:$0xff] %v1046_v62  ;;  %v823_v16 = vpop.f32.mrb[52].mxu0  ;;  %1080 = vst [vmem:[#allocation3 + $0x98] sm:$0xff] %v1048_v48  ;;  %v936_v10 = vpop.f32.mrb[52].mxu1 }
 0x161   :  { %v825_v4 = vpop.f32.mrb[53].mxu0  ;;  %v938_v17 = vpop.f32.mrb[53].mxu1  ;;  %v824_v9 = vadd.f32 %v823_v16, %v2930_v35  ;;  %v937_v3 = vadd.f32 %v936_v10, %v2933_v20 }
 0x162   :  { %v827_v54 = vpop.f32.mrb[54].mxu0  ;;  %v940_v14 = vpop.f32.mrb[54].mxu1  ;;  %v826_v34 = vadd.f32 %v825_v4, %v2936_v43  ;;  %v939_v28 = vadd.f32 %v938_v17, %v2939_v12 }
 0x163   :  { %v828_v18 = vadd.f32 %v827_v54, %v2930_v35  ;;  %v829_v33 = vpop.f32.mrb[55].mxu0  ;;  %v941_v32 = vadd.f32 %v940_v14, %v2933_v20  ;;  %v942_v47 = vpop.f32.mrb[55].mxu1 }
 0x164   :  { %v830_v49 = vadd.f32 %v829_v33, %v2936_v43  ;;  %v943_v19 = vadd.f32 %v942_v47, %v2939_v12 }
 0x165   :  { %v1049_v23 = vpack.c.bf16 %v828_v18, %v824_v9  ;;  %v1051_v2 = vpack.c.bf16 %v941_v32, %v937_v3 }
 0x166   :  { %v1050_v42 = vpack.c.bf16 %v830_v49, %v826_v34  ;;  %v1052_v15 = vpack.c.bf16 %v943_v19, %v939_v28 }
 0x167   :  { %1081 = vst [vmem:[#allocation3 + $0xa0] sm:$0xff] %v1049_v23  ;;  %1083 = vst [vmem:[#allocation3 + $0xb0] sm:$0xff] %v1051_v2 }
 0x168   :  { %1082 = vst [vmem:[#allocation3 + $0xa8] sm:$0xff] %v1050_v42  ;;  %v833_v58 = vpop.f32.mrb[56].mxu0  ;;  %1084 = vst [vmem:[#allocation3 + $0xb8] sm:$0xff] %v1052_v15  ;;  %v946_v62 = vpop.f32.mrb[56].mxu1 }
 0x169   :  { %v835_v48 = vpop.f32.mrb[57].mxu0  ;;  %v948_v16 = vpop.f32.mrb[57].mxu1  ;;  %v834_v4 = vadd.f32 %v833_v58, %v2930_v35  ;;  %v947_v18 = vadd.f32 %v946_v62, %v2933_v20 }
 0x16a   :  { %v837_v10 = vpop.f32.mrb[58].mxu0  ;;  %v950_v17 = vpop.f32.mrb[58].mxu1  ;;  %v836_v14 = vadd.f32 %v835_v48, %v2936_v43  ;;  %v949_v32 = vadd.f32 %v948_v16, %v2939_v12 }
 0x16b   :  { %v838_v54 = vadd.f32 %v837_v10, %v2930_v35  ;;  %v839_v9 = vpop.f32.mrb[59].mxu0  ;;  %v951_v33 = vadd.f32 %v950_v17, %v2933_v20  ;;  %v952_v34 = vpop.f32.mrb[59].mxu1 }
 0x16c   :  { %v840_v3 = vadd.f32 %v839_v9, %v2936_v43  ;;  %v953_v47 = vadd.f32 %v952_v34, %v2939_v12 }
 0x16d   :  { %v1053_v49 = vpack.c.bf16 %v838_v54, %v834_v4  ;;  %v1055_v28 = vpack.c.bf16 %v951_v33, %v947_v18 }
 0x16e   :  { %v1054_v23 = vpack.c.bf16 %v840_v3, %v836_v14  ;;  %v1056_v19 = vpack.c.bf16 %v953_v47, %v949_v32  ;;  %v3005_v47 = vmov 0.0  }
 0x16f   :  { %1085 = vst [vmem:[#allocation3 + $0xc0] sm:$0xff] %v1053_v49  ;;  %1087 = vst [vmem:[#allocation3 + $0xd0] sm:$0xff] %v1055_v28  ;;  %v3007_v28 = vmov 0.0  }
 0x170   :  { %1086 = vst [vmem:[#allocation3 + $0xc8] sm:$0xff] %v1054_v23  ;;  %v843_v2 = vpop.f32.mrb[60].mxu0  ;;  %1088 = vst [vmem:[#allocation3 + $0xd8] sm:$0xff] %v1056_v19  ;;  %v956_v42 = vpop.f32.mrb[60].mxu1  ;;  %v3013_v23 = vmov 0.0   ;;  %v3015_v19 = vmov 0.0  }
 0x171   :  { %v845_v15 = vpop.f32.mrb[61].mxu0  ;;  %v958_v58 = vpop.f32.mrb[61].mxu1  ;;  %v844_v48 = vadd.f32 %v843_v2, %v2930_v35  ;;  %v957_v54 = vadd.f32 %v956_v42, %v2933_v20  ;;  %v3019_v2 = vmov 0.0  }
 0x172   :  { %v847_v62 = vpop.f32.mrb[62].mxu0  ;;  %v960_v16 = vpop.f32.mrb[62].mxu1  ;;  %v846_v17 = vadd.f32 %v845_v15, %v2936_v43  ;;  %v959_v33 = vadd.f32 %v958_v58, %v2939_v12 }
 0x173   :  { %v848_v10 = vadd.f32 %v847_v62, %v2930_v35  ;;  %v849_v4 = vpop.f32.mrb[63].mxu0  ;;  %v961_v9 = vadd.f32 %v960_v16, %v2933_v20  ;;  %v962_v14 = vpop.f32.mrb[63].mxu1  ;;  %v3009_v20 = vmov 0.0  }
 0x174   :  { %v850_v18 = vadd.f32 %v849_v4, %v2936_v43  ;;  %v963_v34 = vadd.f32 %v962_v14, %v2939_v12  ;;  %v3011_v43 = vmov 0.0   ;;  %v3017_v12 = vmov 0.0  }
 0x175   :  { %v1057_v3 = vpack.c.bf16 %v848_v10, %v844_v48  ;;  %v1059_v32 = vpack.c.bf16 %v961_v9, %v957_v54 }
 0x176   :  { %v1058_v49 = vpack.c.bf16 %v850_v18, %v846_v17  ;;  %v1060_v35 = vpack.c.bf16 %v963_v34, %v959_v33 }
 0x177   :  { %1089 = vst [vmem:[#allocation3 + $0xe0] sm:$0xff] %v1057_v3  ;;  %1091 = vst [vmem:[#allocation3 + $0xf0] sm:$0xff] %v1059_v32 }
 0x178   :  { %1090 = vst [vmem:[#allocation3 + $0xe8] sm:$0xff] %v1058_v49  ;;  %1092 = vst [vmem:[#allocation3 + $0xf8] sm:$0xff] %v1060_v35 }
 0x179 LB: > { %v3339_v26 = vld [vmem:[#allocation6_spill] sm:$0xff]  ;;  %v3340_v25 = vld [vmem:[#allocation5_spill] sm:$0xff]  ;;  %v3341_v24 = vld [vmem:[#allocation4_spill] sm:$0xff]  ;;  %v1934_v58 = vcombine.high %v2564_v30, %v2576_v36  ;;  %v1936_v10 = vcombine.high %v2569_v31, %v2581_v37  ;;  %v1933_v16 = vcombine.low %v2564_v30, %v2576_v36  ;;  %v1935_v4 = vcombine.low %v2569_v31, %v2581_v37  ;;  %s2003_s1 = sshll.u32 %s2213_s4, 5  ;;  %s1171_s14 = ssub.s32 7, %s2213_s4  ;;  %v2193_v43 = vphi %v3011_v43, %v1782_v43   ;;  %v2189_v20 = vphi %v3009_v20, %v1783_v20   ;;  %v2185_v28 = vphi %v3007_v28, %v1778_v28   ;;  %v2181_v47 = vphi %v3005_v47, %v1779_v47   ;;  %s2213_s4 = sphi %s3021_s4, %s1162_s4   ;;  %v2209_v2 = vphi %v3019_v2, %v3198_v2   ;;  %v2205_v12 = vphi %v3017_v12, %v3383_v12   ;;  %v2201_v19 = vphi %v3015_v19, %v3192_v19   ;;  %v2197_v23 = vphi %v3013_v23, %v3195_v23  }
 0x17a   : > { %v3342_v22 = vld [vmem:[#allocation16_spill] sm:$0xff]  ;;  %v3343_v21 = vld [vmem:[#allocation15_spill] sm:$0xff]  ;;  %v3344_v13 = vld [vmem:[#allocation14_spill] sm:$0xff]  ;;  %v1930_v42 = vcombine.high %v3341_v24, %v3339_v26  ;;  %v1929_v15 = vcombine.low %v3341_v24, %v3339_v26  ;;  %v1932_v62 = vcombine.high %v3340_v25, %v2559_v29  ;;  %v1931_v48 = vcombine.low %v3340_v25, %v2559_v29  ;;  %s1174_s13 = scalar_lea.vmem [#allocation2], %s2003_s1  ;;  %s2004_s15 = sshll.u32 %s1171_s14, 5 }
 0x17b   : > { %v3345_v11 = vld [vmem:[#allocation12_spill] sm:$0xff]  ;;  %v3346_v8 = vld [vmem:[#allocation13_spill] sm:$0xff]  ;;  %v3347_v7 = vld [vmem:[#allocation11_spill] sm:$0xff]  ;;  %v1938_v54 = vcombine.high %v2586_v38, %v2600_v45  ;;  %v1940_v17 = vcombine.high %v2595_v44, %v2605_v46  ;;  %v2216_v9 = vmov 0   ;;  %v1937_v18 = vcombine.low %v2586_v38, %v2600_v45  ;;  %s1444_s16 = scalar_lea.vmem [#allocation3], %s2004_s15  ;;  %s2007_s17 = sshll.u32 %s2213_s4, 3 }
 0x17c   : > { %v3348_v6 = vld [vmem:[#allocation10_spill] sm:$0xff]  ;;  %v3349_v5 = vld [vmem:[#allocation9_spill] sm:$0xff]  ;;  %v3350_v1 = vld [vmem:[#allocation8_spill] sm:$0xff]  ;;  %1348 = vmatprep.subr.bf16.mxu0 %v1930_v42  ;;  %1391 = vmatprep.subr.bf16.mxu1 %v1932_v62  ;;  %v1939_v14 = vcombine.low %v2595_v44, %v2605_v46  ;;  %v1942_v33 = vcombine.high %v2612_v50, %v2622_v52  ;;  %v1944_v3 = vcombine.high %v2617_v51, %v2627_v55  ;;  %s1794_s0 = scalar_lea.vmem %s3235_s5, %s2007_s17  ;;  %s2010_s20 = sshll.u32 %s1171_s14, 3 }
 0x17d   : > { %v3351_v0 = vld [vmem:[#allocation7_spill] sm:$0xff]  ;;  %1349 = vmatpush1.bf16.msra.mxu0 %v1929_v15  ;;  %1392 = vmatpush1.bf16.msra.mxu1 %v1931_v48  ;;  %v1941_v34 = vcombine.low %v2612_v50, %v2622_v52  ;;  %v1943_v32 = vcombine.low %v2617_v51, %v2627_v55  ;;  %v1946_v49 = vcombine.high %v2632_v56, %v2642_v59  ;;  %s1807_s22 = scalar_lea.vmem %s3236_s6, %s2010_s20  ;;  %s1162_s4 = sadd.s32 1, %s2213_s4  }
 0x17e   : > { %1350 = vmatprep.subr.bf16.mxu0 %v1934_v58  ;;  %1393 = vmatprep.subr.bf16.mxu1 %v1936_v10  ;;  %v1948_v35 = vcombine.high %v2637_v57, %v2647_v60  ;;  %v1945_v42 = vcombine.low %v2632_v56, %v2642_v59  ;;  %v1947_v15 = vcombine.low %v2637_v57, %v2647_v60  ;;  %p1159_p0 = scmp.ge.s32.totalorder %s1162_s4, 8  }
 0x17f   : > { %1380 = vmatprep.mubr.bf16.mxu0 %v2216_v9  ;;  %1423 = vmatprep.mubr.bf16.mxu1 %v2216_v9  ;;  %v1950_v58 = vcombine.high %v2652_v61, %v3351_v0  ;;  %v1952_v62 = vcombine.high %v2657_v63, %v3350_v1  ;;  %v1949_v48 = vcombine.low %v2652_v61, %v3351_v0 }
 0x180   : > { %v1951_v10 = vcombine.low %v2657_v63, %v3350_v1 }
 0x181   : > { %1351 = vmatpush1.bf16.msra.mxu0 %v1933_v16  ;;  %1394 = vmatpush1.bf16.msra.mxu1 %v1935_v4  ;;  %v1954_v16 = vcombine.high %v3349_v5, %v3347_v7  ;;  %v1956_v4 = vcombine.high %v3348_v6, %v3345_v11 }
 0x182   : > { %1352 = vmatprep.subr.bf16.mxu0 %v1938_v54  ;;  %1395 = vmatprep.subr.bf16.mxu1 %v1940_v17  ;;  %v1953_v54 = vcombine.low %v3349_v5, %v3347_v7  ;;  %v1955_v17 = vcombine.low %v3348_v6, %v3345_v11  ;;  %v3368_v5 = vld [vmem:[#allocation29_spill] sm:$0xff]  ;;  %v3370_v7 = vld [vmem:[#allocation32_spill] sm:$0xff] }
 0x183   : > { %v3372_v11 = vld [vmem:[#allocation33_spill] sm:$0xff] }
 0x185   : > { %1353 = vmatpush1.bf16.msra.mxu0 %v1937_v18  ;;  %1396 = vmatpush1.bf16.msra.mxu1 %v1939_v14  ;;  %v1958_v18 = vcombine.high %v3346_v8, %v3343_v21  ;;  %v1960_v14 = vcombine.high %v3344_v13, %v3342_v22 }
 0x186   : > { %1354 = vmatprep.subr.bf16.mxu0 %v1942_v33  ;;  %1397 = vmatprep.subr.bf16.mxu1 %v1944_v3  ;;  %v1957_v33 = vcombine.low %v3346_v8, %v3343_v21  ;;  %v1959_v3 = vcombine.low %v3344_v13, %v3342_v22 }
 0x189   : > { %1355 = vmatpush1.bf16.msra.mxu0 %v1941_v34  ;;  %1398 = vmatpush1.bf16.msra.mxu1 %v1943_v32  ;;  %v1964_v34 = vcombine.high %v2714_v27, %v2728_v40  ;;  %v1966_v32 = vcombine.high %v2723_v39, %v2733_v41 }
 0x18a   : > { %1356 = vmatprep.subr.bf16.mxu0 %v1946_v49  ;;  %1399 = vmatprep.subr.bf16.mxu1 %v1948_v35  ;;  %v1187_v49 = vpack.c.bf16 %v2205_v12, %v2209_v2  ;;  %v1963_v35 = vcombine.low %v2714_v27, %v2728_v40 }
 0x18d   : > { %1357 = vmatpush1.bf16.msra.mxu0 %v1945_v42  ;;  %1400 = vmatpush1.bf16.msra.mxu1 %v1947_v15  ;;  %v1965_v42 = vcombine.low %v2723_v39, %v2733_v41  ;;  %v3352_v15 = vld [vmem:[#allocation17_spill] sm:$0xff] }
 0x18e   : > { %1358 = vmatprep.subr.bf16.mxu0 %v1950_v58  ;;  %1401 = vmatprep.subr.bf16.mxu1 %v1952_v62  ;;  %v1968_v58 = vcombine.high %v3352_v15, %v2750_v53  ;;  %v3353_v62 = vld [vmem:[#allocation19_spill] sm:$0xff]  ;;  %v1967_v12 = vcombine.low %v3352_v15, %v2750_v53 }
 0x191   : > { %1359 = vmatpush1.bf16.msra.mxu0 %v1949_v48  ;;  %1402 = vmatpush1.bf16.msra.mxu1 %v1951_v10  ;;  %v3354_v48 = vld [vmem:[#allocation18_spill] sm:$0xff] }
 0x192   : > { %1360 = vmatprep.subr.bf16.mxu0 %v1954_v16  ;;  %1403 = vmatprep.subr.bf16.mxu1 %v1956_v4  ;;  %v1970_v10 = vcombine.high %v3354_v48, %v3353_v62  ;;  %v1969_v2 = vcombine.low %v3354_v48, %v3353_v62  ;;  %v3355_v16 = vld [vmem:[#allocation22_spill] sm:$0xff]  ;;  %v3356_v4 = vld [vmem:[#allocation20_spill] sm:$0xff] }
 0x195   : > { %1361 = vmatpush1.bf16.msra.mxu0 %v1953_v54  ;;  %1404 = vmatpush1.bf16.msra.mxu1 %v1955_v17  ;;  %v1972_v54 = vcombine.high %v3356_v4, %v3355_v16  ;;  %v3357_v17 = vld [vmem:[#allocation23_spill] sm:$0xff] }
 0x196   : > { %1362 = vmatprep.subr.bf16.mxu0 %v1958_v18  ;;  %1405 = vmatprep.subr.bf16.mxu1 %v1960_v14  ;;  %v3358_v18 = vld [vmem:[#allocation21_spill] sm:$0xff] }
 0x197   : > { %v1974_v14 = vcombine.high %v3358_v18, %v3357_v17 }
 0x199   : > { %1363 = vmatpush1.bf16.msra.mxu0 %v1957_v33  ;;  %1406 = vmatpush1.bf16.msra.mxu1 %v1959_v3  ;;  %v1971_v33 = vcombine.low %v3356_v4, %v3355_v16  ;;  %v1973_v3 = vcombine.low %v3358_v18, %v3357_v17 }
 0x19a   : > { %1618 = vmatprep.subr.bf16.mxu0 %v1964_v34  ;;  %1661 = vmatprep.subr.bf16.mxu1 %v1966_v32  ;;  %v3359_v34 = vld [vmem:[#allocation26_spill] sm:$0xff]  ;;  %v3360_v32 = vld [vmem:[#allocation24_spill] sm:$0xff] }
 0x19c   : > { %1381 = vmatmul.mubr.bf16.vlgmr.msra.gmra.mrb[0].mxu0 %v1187_v49  ;;  %1424 = vmatmul.mubr.bf16.vlgmr.msra.gmra.mrb[0].mxu1 %v1187_v49  ;;  %v1976_v49 = vcombine.high %v3360_v32, %v3359_v34 }
 0x19d   : > { %1619 = vmatpush1.bf16.msra.mxu0 %v1963_v35  ;;  %1662 = vmatpush1.bf16.msra.mxu1 %v1965_v42  ;;  %v3361_v35 = vld [vmem:[#allocation27_spill] sm:$0xff]  ;;  %v3362_v42 = vld [vmem:[#allocation25_spill] sm:$0xff] }
 0x19e   : > { %1620 = vmatprep.subr.bf16.mxu0 %v1968_v58  ;;  %1663 = vmatprep.subr.bf16.mxu1 %v1970_v10  ;;  %v1978_v58 = vcombine.high %v3362_v42, %v3361_v35  ;;  %v1977_v10 = vcombine.low %v3362_v42, %v3361_v35 }
 0x19f   : > { %1650 = vmatprep.mubr.bf16.mxu0 %v2216_v9  ;;  %1693 = vmatprep.mubr.bf16.mxu1 %v2216_v9  ;;  %v1975_v9 = vcombine.low %v3360_v32, %v3359_v34 }
 0x1a1   : > { %1621 = vmatpush1.bf16.msra.mxu0 %v1967_v12  ;;  %1664 = vmatpush1.bf16.msra.mxu1 %v1969_v2  ;;  %v3363_v12 = vld [vmem:[#allocation30_spill] sm:$0xff]  ;;  %v3365_v2 = vld [vmem:[#allocation28_spill] sm:$0xff] }
 0x1a2   : > { %1622 = vmatprep.subr.bf16.mxu0 %v1972_v54  ;;  %1665 = vmatprep.subr.bf16.mxu1 %v1974_v14  ;;  %v3364_v0 = vmov %v3363_v12  ;;  %v3366_v1 = vmov %v3365_v2  ;;  %v1980_v4 = vcombine.high %v3365_v2, %v3363_v12  ;;  %v3367_v54 = vld [vmem:[#allocation31_spill] sm:$0xff]  ;;  %v3374_v2 = vld [vmem:[#allocation36_spill] sm:$0xff] }
 0x1a3   : > { %v1982_v6 = vcombine.high %v3368_v5, %v3367_v54  ;;  %v1979_v14 = vcombine.low %v3366_v1, %v3364_v0  ;;  %v3375_v0 = vmov %v3374_v2 }
 0x1a5   : > { %1623 = vmatpush1.bf16.msra.mxu0 %v1971_v33  ;;  %1666 = vmatpush1.bf16.msra.mxu1 %v1973_v3  ;;  %v1981_v33 = vcombine.low %v3368_v5, %v3367_v54  ;;  %v3369_v3 = vld [vmem:[#allocation34_spill] sm:$0xff]  ;;  %v3377_v5 = vld [vmem:[#allocation37_spill] sm:$0xff] }
 0x1a6   : > { %1624 = vmatprep.subr.bf16.mxu0 %v1976_v49  ;;  %1667 = vmatprep.subr.bf16.mxu1 %v1978_v58  ;;  %v1984_v8 = vcombine.high %v3370_v7, %v3369_v3  ;;  %v3371_v49 = vld [vmem:[#allocation35_spill] sm:$0xff]  ;;  %v1983_v58 = vcombine.low %v3370_v7, %v3369_v3  ;;  %v3379_v3 = vld [vmem:[#allocation40_spill] sm:$0xff] }
 0x1a7   : > { %v1986_v12 = vcombine.high %v3372_v11, %v3371_v49  ;;  %v3380_v7 = vld [vmem:[#allocation43_spill] sm:$0xff] }
 0x1a9   : > { %1625 = vmatpush1.bf16.msra.mxu0 %v1975_v9  ;;  %1668 = vmatpush1.bf16.msra.mxu1 %v1977_v10  ;;  %v1985_v9 = vcombine.low %v3372_v11, %v3371_v49  ;;  %v3373_v10 = vld [vmem:[#allocation38_spill] sm:$0xff] }
 0x1aa   : > { %1626 = vmatprep.subr.bf16.mxu0 %v1980_v4  ;;  %1669 = vmatprep.subr.bf16.mxu1 %v1982_v6  ;;  %v1988_v1 = vcombine.high %v3374_v2, %v3373_v10  ;;  %v3376_v4 = vld [vmem:[#allocation39_spill] sm:$0xff]  ;;  %v1987_v6 = vcombine.low %v3375_v0, %v3373_v10  ;;  %v3381_v2 = vld [vmem:[#allocation41_spill] sm:$0xff] }
 0x1ab   : > { %v1990_v13 = vcombine.high %v3377_v5, %v3376_v4  ;;  %v3382_v11 = vmov %v3381_v2 }
 0x1ad   : > { %1627 = vmatpush1.bf16.msra.mxu0 %v1979_v14  ;;  %1670 = vmatpush1.bf16.msra.mxu1 %v1981_v33  ;;  %v1989_v14 = vcombine.low %v3377_v5, %v3376_v4  ;;  %v3378_v33 = vld [vmem:[#allocation42_spill] sm:$0xff] }
 0x1ae   : > { %1628 = vmatprep.subr.bf16.mxu0 %v1984_v8  ;;  %1671 = vmatprep.subr.bf16.mxu1 %v1986_v12  ;;  %v1992_v8 = vcombine.high %v3379_v3, %v3378_v33  ;;  %v1994_v12 = vcombine.high %v3381_v2, %v3380_v7  ;;  %v1176_v2 = vld [vmem:[%s1174_s13 + $0x8] sm:$0xff] }
 0x1b1   : > { %1629 = vmatpush1.bf16.msra.mxu0 %v1983_v58  ;;  %1672 = vmatpush1.bf16.msra.mxu1 %v1985_v9  ;;  %v1991_v58 = vcombine.low %v3379_v3, %v3378_v33  ;;  %v1993_v9 = vcombine.low %v3382_v11, %v3380_v7  ;;  %v1184_v7 = vunpack.c.h.bf16 %v1176_v2 }
 0x1b2   : > { %1630 = vmatprep.subr.bf16.mxu0 %v1988_v1  ;;  %1673 = vmatprep.subr.bf16.mxu1 %v1990_v13  ;;  %v1457_v1 = vpack.c.bf16 %v2189_v20, %v2193_v43  ;;  %v1175_v13 = vld [vmem:[%s1174_s13] sm:$0xff] }
 0x1b3   : > { %v1179_v0 = vunpack.c.l.bf16 %v1175_v13  ;;  %v1183_v4 = vunpack.c.h.bf16 %v1175_v13 }
 0x1b5   : > { %1631 = vmatpush1.bf16.msra.mxu0 %v1987_v6  ;;  %1674 = vmatpush1.bf16.msra.mxu1 %v1989_v14  ;;  %v1177_v6 = vld [vmem:[%s1174_s13 + $0x10] sm:$0xff]  ;;  %v1180_v14 = vunpack.c.l.bf16 %v1176_v2 }
 0x1b6   : > { %1632 = vmatprep.subr.bf16.mxu0 %v1992_v8  ;;  %1675 = vmatprep.subr.bf16.mxu1 %v1994_v12  ;;  %v1181_v3 = vunpack.c.l.bf16 %v1177_v6 }
 0x1b9   : > { %1633 = vmatpush1.bf16.msra.mxu0 %v1991_v58  ;;  %1676 = vmatpush1.bf16.msra.mxu1 %v1993_v9  ;;  %v1178_v9 = vld [vmem:[%s1174_s13 + $0x18] sm:$0xff] }
 0x1ba   : > { %v1182_v2 = vunpack.c.l.bf16 %v1178_v9 }
 0x1bc   : > { %1651 = vmatmul.mubr.bf16.vlgmr.msra.gmra.mrb[4].mxu0 %v1457_v1  ;;  %1694 = vmatmul.mubr.bf16.vlgmr.msra.gmra.mrb[4].mxu1 %v1457_v1  ;;  %v1185_v1 = vunpack.c.h.bf16 %v1177_v6 }
 0x26f   : > { %v1382_v5 = vpop.f32.mrb[0].mxu0  ;;  %v1425_v8 = vpop.f32.mrb[0].mxu1 }
 0x270   : > { %v1434_v12 = vadd.f32 %v1382_v5, %v1179_v0  ;;  %v1384_v10 = vpop.f32.mrb[1].mxu0  ;;  %v1436_v11 = vadd.f32 %v1425_v8, %v1181_v3  ;;  %v1427_v20 = vpop.f32.mrb[1].mxu1  ;;  %v1186_v3 = vunpack.c.h.bf16 %v1178_v9 }
 0x271   : > { %v1435_v43 = vadd.f32 %v1384_v10, %v1180_v14  ;;  %v1386_v58 = vpop.f32.mrb[2].mxu0  ;;  %v1429_v15 = vpop.f32.mrb[2].mxu1  ;;  %v1437_v10 = vadd.f32 %v1427_v20, %v1182_v2 }
 0x272   : > { %v1712_v16 = vmul.f32 0.5, %v1434_v12  ;;  %v1438_v17 = vadd.f32 %v1386_v58, %v1183_v4  ;;  %v1388_v18 = vpop.f32.mrb[3].mxu0  ;;  %v1431_v21 = vpop.f32.mrb[3].mxu1  ;;  %2103 = vtanh.f32 %v1436_v11  ;;  %v1440_v5 = vadd.f32 %v1429_v15, %v1185_v1 }
 0x273   : > { %v1720_v22 = vmul.f32 0.5, %v1435_v43  ;;  %v1439_v24 = vadd.f32 %v1388_v18, %v1184_v7  ;;  %v1441_v6 = vadd.f32 %v1431_v21, %v1186_v3  ;;  %v1730_v14 = vmul.f32 0.5, %v1437_v10  ;;  %v1446_v10 = vld [vmem:[%s1444_s16 + $0x8] sm:$0xff] }
 0x274   : > { %2105 = vtanh.f32 %v1712_v16  ;;  %v1713_v13 = vmul.f32 0.5, %v1438_v17 }
 0x275   : > { %2107 = vtanh.f32 %v1720_v22  ;;  %v1721_v0 = vmul.f32 0.5, %v1439_v24  ;;  %v1731_v8 = vmul.f32 0.5, %v1441_v6 }
 0x276   : > { %2109 = vtanh.f32 %v1713_v13 }
 0x277   : > { %2111 = vtanh.f32 %v1721_v0  ;;  %v1445_v0 = vld [vmem:[%s1444_s16] sm:$0xff] }
 0x278   : > { %2113 = vtanh.f32 %v1440_v5  ;;  %v1447_v5 = vld [vmem:[%s1444_s16 + $0x10] sm:$0xff] }
 0x279   : > { %2115 = vtanh.f32 %v1730_v14  ;;  %v1449_v14 = vunpack.c.l.bf16 %v1445_v0 }
 0x27a   : > { %2117 = vtanh.f32 %v1731_v8 }
 0x27c   : > { %v2104_v4 = vpop.eup %2103 }
 0x27e   : > { %v2106_v12 = vpop.eup %2105 }
 0x27f   : > { %v2108_v7 = vpop.eup %2107  ;;  %v1716_v11 = vadd.f32 1.0, %v2106_v12  ;;  %v1450_v12 = vunpack.c.l.bf16 %v1446_v10 }
 0x280   : > { %v2110_v16 = vpop.eup %2109  ;;  %v1724_v17 = vadd.f32 1.0, %v2108_v7 }
 0x281   : > { %v2112_v24 = vpop.eup %2111  ;;  %v1718_v22 = vmul.f32 0.5, %v1716_v11  ;;  %v1717_v15 = vadd.f32 1.0, %v2110_v16  ;;  %v1453_v11 = vunpack.c.h.bf16 %v1445_v0 }
 0x282   : > { %v1726_v18 = vmul.f32 0.5, %v1724_v17  ;;  %v1725_v43 = vadd.f32 1.0, %v2112_v24  ;;  %v2114_v20 = vpop.eup %2113  ;;  %v1454_v17 = vunpack.c.h.bf16 %v1446_v10 }
 0x283   : > { %v1719_v58 = vmul.f32 0.5, %v1717_v15  ;;  %v1740_v21 = vmul.f32 %v2104_v4, %v1718_v22  ;;  %v2116_v3 = vpop.eup %2115  ;;  %v1451_v4 = vunpack.c.l.bf16 %v1447_v5 }
 0x284   : > { %v1738_v9 = vmul.f32 %v2201_v19, %v1726_v18  ;;  %v1727_v1 = vmul.f32 0.5, %v1725_v43  ;;  %v2118_v6 = vpop.eup %2117  ;;  %v1734_v8 = vadd.f32 1.0, %v2116_v3 }
 0x285   : > { %v1741_v13 = vmul.f32 %v2114_v20, %v1719_v58  ;;  %v1735_v7 = vadd.f32 1.0, %v2118_v6 }
 0x286   : > { %v1739_v2 = vmul.f32 %v2197_v23, %v1727_v1  ;;  %v3192_v19 = vadd.f32 %v1740_v21, %v1738_v9   ;;  %v1736_v20 = vmul.f32 0.5, %v1734_v8  ;;  %v1448_v9 = vld [vmem:[%s1444_s16 + $0x18] sm:$0xff]  ;;  %v1455_v1 = vunpack.c.h.bf16 %v1447_v5 }
 0x287   : > { %v1737_v25 = vmul.f32 0.5, %v1735_v7  ;;  %v1456_v7 = vunpack.c.h.bf16 %v1448_v9 }
 0x288   : > { %2119 = vtanh.f32 %v3192_v19  ;;  %v3195_v23 = vadd.f32 %v1741_v13, %v1739_v2  }
 0x28a   : > { %2121 = vtanh.f32 %v3195_v23 }
 0x28f   : > { %v1652_v16 = vpop.f32.mrb[4].mxu0  ;;  %v1695_v24 = vpop.f32.mrb[4].mxu1 }
 0x290   : > { %v1704_v22 = vadd.f32 %v1652_v16, %v1449_v14  ;;  %v1654_v15 = vpop.f32.mrb[5].mxu0  ;;  %v1706_v18 = vadd.f32 %v1695_v24, %v1451_v4  ;;  %v1697_v43 = vpop.f32.mrb[5].mxu1 }
 0x291   : > { %v1705_v58 = vadd.f32 %v1654_v15, %v1450_v12  ;;  %v1656_v21 = vpop.f32.mrb[6].mxu0  ;;  %v1699_v13 = vpop.f32.mrb[6].mxu1  ;;  %v1452_v12 = vunpack.c.l.bf16 %v1448_v9 }
 0x292   : > { %v2120_v2 = vpop.eup %2119  ;;  %v1748_v3 = vmul.f32 0.5, %v1704_v22  ;;  %v1708_v26 = vadd.f32 %v1656_v21, %v1453_v11  ;;  %v1658_v6 = vpop.f32.mrb[7].mxu0  ;;  %2123 = vtanh.f32 %v1706_v18  ;;  %v1710_v24 = vadd.f32 %v1699_v13, %v1455_v1 }
 0x293   : > { %v1701_v0 = vpop.f32.mrb[7].mxu1  ;;  %v3198_v2 = vmul.f32 %v2120_v2, %v1736_v20   ;;  %v1756_v10 = vmul.f32 0.5, %v1705_v58  ;;  %v1709_v14 = vadd.f32 %v1658_v6, %v1454_v17  ;;  %v1707_v22 = vadd.f32 %v1697_v43, %v1452_v12 }
 0x294   : > { %v2122_v4 = vpop.eup %2121  ;;  %2125 = vtanh.f32 %v1748_v3  ;;  %v1749_v8 = vmul.f32 0.5, %v1708_v26  ;;  %v1711_v17 = vadd.f32 %v1701_v0, %v1456_v7 }
 0x295   : > { %v1747_v16 = vmul.f32 %v2122_v4, %v1737_v25   ;;  %2127 = vtanh.f32 %v1756_v10  ;;  %v1757_v5 = vmul.f32 0.5, %v1709_v14  ;;  %v1766_v15 = vmul.f32 0.5, %v1707_v22 }
 0x296   : > { %2129 = vtanh.f32 %v1749_v8  ;;  %v1767_v25 = vmul.f32 0.5, %v1711_v17 }
 0x297   : > { %v2014_v11 = vpack.c.bf16 %v1747_v16, %v3198_v2  ;;  %2131 = vtanh.f32 %v1757_v5 }
 0x298   : > { %2133 = vtanh.f32 %v1710_v24 }
 0x299   : > { %2015 = vst [vmem:[%s1794_s0] sm:$0xff] %v2014_v11   ;;  %2135 = vtanh.f32 %v1766_v15 }
 0x29a   : > { %2137 = vtanh.f32 %v1767_v25 }
 0x29c   : > { %v2124_v26 = vpop.eup %2123 }
 0x29e   : > { %v2126_v18 = vpop.eup %2125 }
 0x29f   : > { %v2128_v20 = vpop.eup %2127  ;;  %v1752_v58 = vadd.f32 1.0, %v2126_v18 }
 0x2a0   : > { %v2130_v21 = vpop.eup %2129  ;;  %v1760_v1 = vadd.f32 1.0, %v2128_v20 }
 0x2a1   : > { %v2132_v13 = vpop.eup %2131  ;;  %v1754_v3 = vmul.f32 0.5, %v1752_v58  ;;  %v1753_v6 = vadd.f32 1.0, %v2130_v21 }
 0x2a2   : > { %v1762_v9 = vmul.f32 0.5, %v1760_v1  ;;  %v1761_v10 = vadd.f32 1.0, %v2132_v13  ;;  %v2134_v14 = vpop.eup %2133 }
 0x2a3   : > { %v1755_v43 = vmul.f32 0.5, %v1753_v6  ;;  %v1776_v4 = vmul.f32 %v2124_v26, %v1754_v3  ;;  %v2136_v24 = vpop.eup %2135 }
 0x2a4   : > { %v1774_v0 = vmul.f32 %v2185_v28, %v1762_v9  ;;  %v1763_v8 = vmul.f32 0.5, %v1761_v10  ;;  %v2138_v7 = vpop.eup %2137  ;;  %v1770_v11 = vadd.f32 1.0, %v2136_v24 }
 0x2a5   : > { %v1777_v12 = vmul.f32 %v2134_v14, %v1755_v43  ;;  %v1771_v22 = vadd.f32 1.0, %v2138_v7 }
 0x2a6   : > { %v1775_v5 = vmul.f32 %v2181_v47, %v1763_v8  ;;  %v1778_v28 = vadd.f32 %v1776_v4, %v1774_v0   ;;  %v1772_v17 = vmul.f32 0.5, %v1770_v11 }
 0x2a7   : > { %v1773_v26 = vmul.f32 0.5, %v1771_v22 }
 0x2a8   : > { %2139 = vtanh.f32 %v1778_v28  ;;  %v1779_v47 = vadd.f32 %v1777_v12, %v1775_v5   ;;  %v3383_v12 = vmov %v1747_v16 }
 0x2aa   : > { %2141 = vtanh.f32 %v1779_v47 }
 0x2b2   : > { %v2140_v15 = vpop.eup %2139 }
 0x2b3   : > { %v1782_v43 = vmul.f32 %v2140_v15, %v1772_v17   ;;  %1161 = sbr.rel (!%p1159_p0) target bundleno = 377 (0x179), region = 59 }
 0x2b4   : > { %v2142_v18 = vpop.eup %2141 }
 0x2b5   : > { %v1783_v20 = vmul.f32 %v2142_v18, %v1773_v26  }
 0x2b7   : > { %v2019_v25 = vpack.c.bf16 %v1783_v20, %v1782_v43 }
 0x2b9   : > { %2020 = vst [vmem:[%s1807_s22] sm:$0xff] %v2019_v25  }

</bundles_post_ra>
